<compile_context>
chip_gen: v6e
topology: v6e:2x2x1
jax: 0.10.0
libtpu: 0.0.40
codegen_flags: <defaults>
</compile_context>

<pallas_src>
import functools

import jax
import jax.numpy as jnp
from jax.experimental import pallas as pl

# ---------------- scaled-down vit_tiny_patch16 config ----------------
IMG, PATCH, IN_CH = 32, 16, 3          # small spatial, real patch size
EMBED, DEPTH, HEADS = 32, 2, 2         # (tiny-ified: 192/12/3 in the real model)
MLP_HID = 4 * EMBED
NUM_CLASSES = 5
BATCH = 2
N_PATCH = (IMG // PATCH) ** 2          # 4 patches
SEQ = N_PATCH + 1                      # + cls token
HEAD_DIM = EMBED // HEADS
LN_EPS = 1e-6                          # timm ViT LayerNorm eps


# ---------------- in-kernel helpers (traced inside the Pallas body) ----------------
def _ln(x, g, b):
    mu = jnp.mean(x, axis=-1, keepdims=True)
    var = jnp.mean(jnp.square(x - mu), axis=-1, keepdims=True)
    return (x - mu) * jax.lax.rsqrt(var + LN_EPS) * g + b


def _erf(x):
    # Abramowitz & Stegun 7.1.26 rational approximation of erf.
    # Max abs error ~1.5e-7 (at fp32 precision), so GELU(x)=0.5*x*(1+erf(x/sqrt(2)))
    # matches torch's exact-erf nn.GELU to fp32 accuracy. Uses only exp / mul /
    # add / where, all of which have guaranteed Mosaic lowerings.
    a1, a2, a3, a4, a5 = 0.254829592, -0.284496736, 1.421413741, -1.453152027, 1.061405429
    p = 0.3275911
    ax = jnp.abs(x)
    t = 1.0 / (1.0 + p * ax)
    poly = ((((a5 * t + a4) * t + a3) * t + a2) * t + a1) * t
    y = 1.0 - poly * jnp.exp(-ax * ax)
    return jnp.where(x < 0.0, -y, y)


def _gelu_exact(x):
    return 0.5 * x * (1.0 + _erf(x * (2.0 ** -0.5)))


# ---------------- the single fused ViT kernel ----------------
def _vit_kernel(patches_ref, patch_w_ref, patch_b_ref, cls_ref, pos_ref,
                ln1_g_ref, ln1_b_ref, qkv_w_ref, qkv_b_ref,
                proj_w_ref, proj_b_ref, ln2_g_ref, ln2_b_ref,
                fc1_w_ref, fc1_b_ref, fc2_w_ref, fc2_b_ref,
                norm_g_ref, norm_b_ref, head_w_ref, head_b_ref,
                out_ref, *, batch):
    # ---- patch embedding (Conv2d(k=16, s=16) == matmul on unfolded patches) ----
    tok = jnp.dot(patches_ref[...], patch_w_ref[...],
                  preferred_element_type=jnp.float32) + patch_b_ref[...]      # (B*N_PATCH, D)
    cls = cls_ref[...]                                                        # (1, D)
    pos = pos_ref[...]                                                        # (SEQ, D)

    rows = []
    for b in range(batch):
        hb = jnp.concatenate([cls, tok[b * N_PATCH:(b + 1) * N_PATCH]], axis=0) + pos
        rows.append(hb)
    h = jnp.concatenate(rows, axis=0)                                         # (B*SEQ, D)

    scale = HEAD_DIM ** -0.5
    for d in range(DEPTH):                                                    # static unroll
        # ---- multi-head self-attention ----
        hn = _ln(h, ln1_g_ref[d], ln1_b_ref[d])
        qkv = jnp.dot(hn, qkv_w_ref[d],
                      preferred_element_type=jnp.float32) + qkv_b_ref[d]      # (B*SEQ, 3D)

        batch_out = []
        for b in range(batch):
            qkv_b = qkv[b * SEQ:(b + 1) * SEQ]                                # (SEQ, 3D)
            per_head = []
            for hx in range(HEADS):
                c0 = hx * HEAD_DIM
                q = qkv_b[:, c0:c0 + HEAD_DIM]
                k = qkv_b[:, EMBED + c0:EMBED + c0 + HEAD_DIM]
                v = qkv_b[:, 2 * EMBED + c0:2 * EMBED + c0 + HEAD_DIM]
                # q @ k^T via contracting dims (no explicit transpose)
                s = jax.lax.dot_general(
                    q, k, (((1,), (1,)), ((), ())),
                    preferred_element_type=jnp.float32) * scale               # (SEQ, SEQ)
                s = s - jnp.max(s, axis=-1, keepdims=True)
                p = jnp.exp(s)
                p = p * pl.reciprocal(jnp.sum(p, axis=-1, keepdims=True), approx=True)
                per_head.append(jnp.dot(p, v, preferred_element_type=jnp.float32))
            batch_out.append(jnp.concatenate(per_head, axis=-1))              # (SEQ, D)
        a = jnp.concatenate(batch_out, axis=0)                                # (B*SEQ, D)

        h = h + jnp.dot(a, proj_w_ref[d],
                        preferred_element_type=jnp.float32) + proj_b_ref[d]

        # ---- MLP with fused exact-style GELU ----
        hn = _ln(h, ln2_g_ref[d], ln2_b_ref[d])
        f = jnp.dot(hn, fc1_w_ref[d],
                    preferred_element_type=jnp.float32) + fc1_b_ref[d]        # (B*SEQ, 4D)
        f = _gelu_exact(f)
        h = h + jnp.dot(f, fc2_w_ref[d],
                        preferred_element_type=jnp.float32) + fc2_b_ref[d]

    # ---- final LayerNorm + head: cls-token rows only ----
    cls_rows = jnp.concatenate([h[b * SEQ:b * SEQ + 1] for b in range(batch)], axis=0)
    cls_rows = _ln(cls_rows, norm_g_ref[...], norm_b_ref[...])                # (B, D)
    out_ref[...] = (jnp.dot(cls_rows, head_w_ref[...],
                            preferred_element_type=jnp.float32) + head_b_ref[...])


# ---------------- forward pass: one pallas_call + minimal JAX glue ----------------
def vit_forward(params, x):
    B = x.shape[0]
    P = PATCH
    hp = wp = IMG // P

    # NCHW -> (B*N_PATCH, IN_CH*P*P), matching Conv2d weight flattening (C, kh, kw).
    patches = x.reshape(B, IN_CH, hp, P, wp, P)
    patches = patches.transpose(0, 2, 4, 1, 3, 5).reshape(B * N_PATCH, IN_CH * P * P)

    kern = functools.partial(_vit_kernel, batch=B)
    return pl.pallas_call(
        kern,
        out_shape=jax.ShapeDtypeStruct((B, NUM_CLASSES), jnp.float32),
        # no grid / BlockSpecs: every operand is a whole-array VMEM block,
        # the entire network runs in a single grid step.
    )(patches,
      params["patch_w"], params["patch_b"], params["cls_token"], params["pos_embed"],
      params["ln1_g"], params["ln1_b"], params["qkv_w"], params["qkv_b"],
      params["proj_w"], params["proj_b"], params["ln2_g"], params["ln2_b"],
      params["fc1_w"], params["fc1_b"], params["fc2_w"], params["fc2_b"],
      params["norm_g"], params["norm_b"], params["head_w"], params["head_b"])


# ---------------- deterministic parameter init (stacked per-block weights) ----------------
def init_params(key):
    kit = iter(jax.random.split(key, 64))

    def nrm(shape, std=0.02):
        return jax.random.normal(next(kit), shape, jnp.float32) * std

    def stacked(shape):
        return jnp.stack([nrm(shape) for _ in range(DEPTH)], axis=0)

    # TODO(synk): pretrained timm weights cannot be loaded here; weights are
    # synthesized deterministically with the correct shapes instead.
    return {
        "patch_w": nrm((IN_CH * PATCH * PATCH, EMBED)),
        "patch_b": jnp.zeros((1, EMBED), jnp.float32),
        "cls_token": nrm((1, EMBED)),
        "pos_embed": nrm((SEQ, EMBED)),
        # per-block weights stacked along a leading DEPTH axis (sliced in-kernel)
        "ln1_g": jnp.ones((DEPTH, 1, EMBED), jnp.float32),
        "ln1_b": jnp.zeros((DEPTH, 1, EMBED), jnp.float32),
        "qkv_w": stacked((EMBED, 3 * EMBED)),
        "qkv_b": jnp.zeros((DEPTH, 1, 3 * EMBED), jnp.float32),
        "proj_w": stacked((EMBED, EMBED)),
        "proj_b": jnp.zeros((DEPTH, 1, EMBED), jnp.float32),
        "ln2_g": jnp.ones((DEPTH, 1, EMBED), jnp.float32),
        "ln2_b": jnp.zeros((DEPTH, 1, EMBED), jnp.float32),
        "fc1_w": stacked((EMBED, MLP_HID)),
        "fc1_b": jnp.zeros((DEPTH, 1, MLP_HID), jnp.float32),
        "fc2_w": stacked((MLP_HID, EMBED)),
        "fc2_b": jnp.zeros((DEPTH, 1, EMBED), jnp.float32),
        "norm_g": jnp.ones((1, EMBED), jnp.float32),
        "norm_b": jnp.zeros((1, EMBED), jnp.float32),
        "head_w": nrm((EMBED, NUM_CLASSES)),
        "head_b": jnp.zeros((1, NUM_CLASSES), jnp.float32),
    }


if __name__ == "__main__":
    key = jax.random.PRNGKey(0)
    pkey, xkey = jax.random.split(key)
    params = init_params(pkey)
    x = jax.random.normal(xkey, (BATCH, IN_CH, IMG, IMG), jnp.float32)   # NCHW
    logits = jax.jit(vit_forward)(params, x)
    jax.block_until_ready(logits)
    assert logits.shape == (BATCH, NUM_CLASSES)
    print("KERNEL_OK")
</pallas_src>

<mosaic_0001>
module attributes {stable_mosaic.version = 11 : i64} {
  func.func @_vit_kernel(%arg0: memref<8x768xf32, #tpu.memory_space<vmem>>, %arg1: memref<768x32xf32, #tpu.memory_space<vmem>>, %arg2: memref<1x32xf32, #tpu.memory_space<vmem>>, %arg3: memref<1x32xf32, #tpu.memory_space<vmem>>, %arg4: memref<5x32xf32, #tpu.memory_space<vmem>>, %arg5: memref<2x1x32xf32, #tpu.memory_space<vmem>>, %arg6: memref<2x1x32xf32, #tpu.memory_space<vmem>>, %arg7: memref<2x32x96xf32, #tpu.memory_space<vmem>>, %arg8: memref<2x1x96xf32, #tpu.memory_space<vmem>>, %arg9: memref<2x32x32xf32, #tpu.memory_space<vmem>>, %arg10: memref<2x1x32xf32, #tpu.memory_space<vmem>>, %arg11: memref<2x1x32xf32, #tpu.memory_space<vmem>>, %arg12: memref<2x1x32xf32, #tpu.memory_space<vmem>>, %arg13: memref<2x32x128xf32, #tpu.memory_space<vmem>>, %arg14: memref<2x1x128xf32, #tpu.memory_space<vmem>>, %arg15: memref<2x128x32xf32, #tpu.memory_space<vmem>>, %arg16: memref<2x1x32xf32, #tpu.memory_space<vmem>>, %arg17: memref<1x32xf32, #tpu.memory_space<vmem>>, %arg18: memref<1x32xf32, #tpu.memory_space<vmem>>, %arg19: memref<32x5xf32, #tpu.memory_space<vmem>>, %arg20: memref<1x5xf32, #tpu.memory_space<vmem>>, %arg21: memref<2x5xf32, #tpu.memory_space<vmem>>) attributes {dimension_semantics = [], scalar_prefetch = 0 : i64, scratch_operands = 0 : i64, tpu.core_type = #tpu.core_type<tc>} {
    %c0 = arith.constant 0 : index
    %c0_0 = arith.constant 0 : index
    %0 = vector.load %arg0[%c0, %c0_0] : memref<8x768xf32, #tpu.memory_space<vmem>>, vector<8x768xf32>
    %c0_1 = arith.constant 0 : index
    %c0_2 = arith.constant 0 : index
    %1 = vector.load %arg1[%c0_1, %c0_2] : memref<768x32xf32, #tpu.memory_space<vmem>>, vector<768x32xf32>
    %cst = arith.constant dense<0.000000e+00> : vector<8x32xf32>
    %2 = tpu.matmul %0, %1, %cst {dimension_numbers = #tpu.dot_dimension_numbers<[1], [0], [0], [1], [0, 0, 1, 1], [], []>} : vector<8x768xf32>, vector<768x32xf32>, vector<8x32xf32> -> vector<8x32xf32>
    %c0_3 = arith.constant 0 : index
    %c0_4 = arith.constant 0 : index
    %3 = vector.load %arg2[%c0_3, %c0_4] : memref<1x32xf32, #tpu.memory_space<vmem>>, vector<1x32xf32>
    %4 = vector.broadcast %3 : vector<1x32xf32> to vector<8x32xf32>
    %5 = arith.addf %2, %4 : vector<8x32xf32>
    %c0_5 = arith.constant 0 : index
    %c0_6 = arith.constant 0 : index
    %6 = vector.load %arg3[%c0_5, %c0_6] : memref<1x32xf32, #tpu.memory_space<vmem>>, vector<1x32xf32>
    %c0_7 = arith.constant 0 : index
    %c0_8 = arith.constant 0 : index
    %7 = vector.load %arg4[%c0_7, %c0_8] : memref<5x32xf32, #tpu.memory_space<vmem>>, vector<5x32xf32>
    %8 = vector.extract_strided_slice %5 {offsets = [0, 0], sizes = [4, 32], strides = [1, 1]} : vector<8x32xf32> to vector<4x32xf32>
    %9 = tpu.concatenate %6, %8 in 0 : vector<1x32xf32>, vector<4x32xf32> -> vector<5x32xf32>
    %10 = arith.addf %9, %7 : vector<5x32xf32>
    %11 = vector.extract_strided_slice %5 {offsets = [4, 0], sizes = [4, 32], strides = [1, 1]} : vector<8x32xf32> to vector<4x32xf32>
    %12 = tpu.concatenate %6, %11 in 0 : vector<1x32xf32>, vector<4x32xf32> -> vector<5x32xf32>
    %13 = arith.addf %12, %7 : vector<5x32xf32>
    %14 = tpu.concatenate %10, %13 in 0 : vector<5x32xf32>, vector<5x32xf32> -> vector<10x32xf32>
    %c0_9 = arith.constant 0 : index
    %c0_10 = arith.constant 0 : index
    %c0_11 = arith.constant 0 : index
    %15 = vector.load %arg5[%c0_9, %c0_10, %c0_11] : memref<2x1x32xf32, #tpu.memory_space<vmem>>, vector<1x1x32xf32>
    %16 = vector.shape_cast %15 : vector<1x1x32xf32> to vector<1x32xf32>
    %c0_12 = arith.constant 0 : index
    %c0_13 = arith.constant 0 : index
    %c0_14 = arith.constant 0 : index
    %17 = vector.load %arg6[%c0_12, %c0_13, %c0_14] : memref<2x1x32xf32, #tpu.memory_space<vmem>>, vector<1x1x32xf32>
    %18 = vector.shape_cast %17 : vector<1x1x32xf32> to vector<1x32xf32>
    %cst_15 = arith.constant dense<0.000000e+00> : vector<10xf32>
    %19 = vector.multi_reduction <add>, %14, %cst_15 [1] : vector<10x32xf32> to vector<10xf32>
    %20 = vector.shape_cast %19 : vector<10xf32> to vector<10x1xf32>
    %cst_16 = arith.constant 3.200000e+01 : f32
    %21 = vector.broadcast %cst_16 : f32 to vector<10x1xf32>
    %22 = arith.divf %20, %21 : vector<10x1xf32>
    %23 = vector.broadcast %22 : vector<10x1xf32> to vector<10x32xf32>
    %24 = arith.subf %14, %23 : vector<10x32xf32>
    %25 = arith.mulf %24, %24 : vector<10x32xf32>
    %cst_17 = arith.constant dense<0.000000e+00> : vector<10xf32>
    %26 = vector.multi_reduction <add>, %25, %cst_17 [1] : vector<10x32xf32> to vector<10xf32>
    %27 = vector.shape_cast %26 : vector<10xf32> to vector<10x1xf32>
    %cst_18 = arith.constant 3.200000e+01 : f32
    %28 = vector.broadcast %cst_18 : f32 to vector<10x1xf32>
    %29 = arith.divf %27, %28 : vector<10x1xf32>
    %30 = vector.broadcast %22 : vector<10x1xf32> to vector<10x32xf32>
    %31 = arith.subf %14, %30 : vector<10x32xf32>
    %cst_19 = arith.constant 9.99999997E-7 : f32
    %32 = vector.broadcast %cst_19 : f32 to vector<10x1xf32>
    %33 = arith.addf %29, %32 : vector<10x1xf32>
    %34 = math.rsqrt %33 : vector<10x1xf32>
    %35 = vector.broadcast %34 : vector<10x1xf32> to vector<10x32xf32>
    %36 = arith.mulf %31, %35 : vector<10x32xf32>
    %37 = vector.broadcast %16 : vector<1x32xf32> to vector<10x32xf32>
    %38 = arith.mulf %36, %37 : vector<10x32xf32>
    %39 = vector.broadcast %18 : vector<1x32xf32> to vector<10x32xf32>
    %40 = arith.addf %38, %39 : vector<10x32xf32>
    %c0_20 = arith.constant 0 : index
    %c0_21 = arith.constant 0 : index
    %c0_22 = arith.constant 0 : index
    %41 = vector.load %arg7[%c0_20, %c0_21, %c0_22] : memref<2x32x96xf32, #tpu.memory_space<vmem>>, vector<1x32x96xf32>
    %42 = vector.shape_cast %41 : vector<1x32x96xf32> to vector<32x96xf32>
    %cst_23 = arith.constant dense<0.000000e+00> : vector<10x96xf32>
    %43 = tpu.matmul %40, %42, %cst_23 {dimension_numbers = #tpu.dot_dimension_numbers<[1], [0], [0], [1], [0, 0, 1, 1], [], []>} : vector<10x32xf32>, vector<32x96xf32>, vector<10x96xf32> -> vector<10x96xf32>
    %c0_24 = arith.constant 0 : index
    %c0_25 = arith.constant 0 : index
    %c0_26 = arith.constant 0 : index
    %44 = vector.load %arg8[%c0_24, %c0_25, %c0_26] : memref<2x1x96xf32, #tpu.memory_space<vmem>>, vector<1x1x96xf32>
    %45 = vector.shape_cast %44 : vector<1x1x96xf32> to vector<1x96xf32>
    %46 = vector.broadcast %45 : vector<1x96xf32> to vector<10x96xf32>
    %47 = arith.addf %43, %46 : vector<10x96xf32>
    %48 = vector.extract_strided_slice %47 {offsets = [0, 0], sizes = [5, 96], strides = [1, 1]} : vector<10x96xf32> to vector<5x96xf32>
    %49 = vector.extract_strided_slice %48 {offsets = [0, 0], sizes = [5, 16], strides = [1, 1]} : vector<5x96xf32> to vector<5x16xf32>
    %50 = vector.extract_strided_slice %48 {offsets = [0, 32], sizes = [5, 16], strides = [1, 1]} : vector<5x96xf32> to vector<5x16xf32>
    %51 = vector.extract_strided_slice %48 {offsets = [0, 64], sizes = [5, 16], strides = [1, 1]} : vector<5x96xf32> to vector<5x16xf32>
    %cst_27 = arith.constant dense<0.000000e+00> : vector<5x5xf32>
    %52 = tpu.matmul %49, %50, %cst_27 {dimension_numbers = #tpu.dot_dimension_numbers<[1], [1], [0], [0], [0, 0, 1, 0], [], []>} : vector<5x16xf32>, vector<5x16xf32>, vector<5x5xf32> -> vector<5x5xf32>
    %cst_28 = arith.constant 2.500000e-01 : f32
    %53 = vector.broadcast %cst_28 : f32 to vector<5x5xf32>
    %54 = arith.mulf %52, %53 : vector<5x5xf32>
    %cst_29 = arith.constant dense<0xFF800000> : vector<5xf32>
    %55 = vector.multi_reduction <maximumf>, %54, %cst_29 [1] : vector<5x5xf32> to vector<5xf32>
    %56 = vector.shape_cast %55 : vector<5xf32> to vector<5x1xf32>
    %57 = vector.broadcast %56 : vector<5x1xf32> to vector<5x5xf32>
    %58 = arith.subf %54, %57 : vector<5x5xf32>
    %59 = math.exp %58 : vector<5x5xf32>
    %cst_30 = arith.constant dense<0.000000e+00> : vector<5xf32>
    %60 = vector.multi_reduction <add>, %59, %cst_30 [1] : vector<5x5xf32> to vector<5xf32>
    %61 = vector.shape_cast %60 : vector<5xf32> to vector<5x1xf32>
    %62 = tpu.reciprocal %61 {approx = true} : vector<5x1xf32> -> vector<5x1xf32>
    %63 = vector.broadcast %62 : vector<5x1xf32> to vector<5x5xf32>
    %64 = arith.mulf %59, %63 : vector<5x5xf32>
    %cst_31 = arith.constant dense<0.000000e+00> : vector<5x16xf32>
    %65 = tpu.matmul %64, %51, %cst_31 {dimension_numbers = #tpu.dot_dimension_numbers<[1], [0], [0], [1], [0, 0, 1, 1], [], []>} : vector<5x5xf32>, vector<5x16xf32>, vector<5x16xf32> -> vector<5x16xf32>
    %66 = vector.extract_strided_slice %48 {offsets = [0, 16], sizes = [5, 16], strides = [1, 1]} : vector<5x96xf32> to vector<5x16xf32>
    %67 = vector.extract_strided_slice %48 {offsets = [0, 48], sizes = [5, 16], strides = [1, 1]} : vector<5x96xf32> to vector<5x16xf32>
    %68 = vector.extract_strided_slice %48 {offsets = [0, 80], sizes = [5, 16], strides = [1, 1]} : vector<5x96xf32> to vector<5x16xf32>
    %cst_32 = arith.constant dense<0.000000e+00> : vector<5x5xf32>
    %69 = tpu.matmul %66, %67, %cst_32 {dimension_numbers = #tpu.dot_dimension_numbers<[1], [1], [0], [0], [0, 0, 1, 0], [], []>} : vector<5x16xf32>, vector<5x16xf32>, vector<5x5xf32> -> vector<5x5xf32>
    %cst_33 = arith.constant 2.500000e-01 : f32
    %70 = vector.broadcast %cst_33 : f32 to vector<5x5xf32>
    %71 = arith.mulf %69, %70 : vector<5x5xf32>
    %cst_34 = arith.constant dense<0xFF800000> : vector<5xf32>
    %72 = vector.multi_reduction <maximumf>, %71, %cst_34 [1] : vector<5x5xf32> to vector<5xf32>
    %73 = vector.shape_cast %72 : vector<5xf32> to vector<5x1xf32>
    %74 = vector.broadcast %73 : vector<5x1xf32> to vector<5x5xf32>
    %75 = arith.subf %71, %74 : vector<5x5xf32>
    %76 = math.exp %75 : vector<5x5xf32>
    %cst_35 = arith.constant dense<0.000000e+00> : vector<5xf32>
    %77 = vector.multi_reduction <add>, %76, %cst_35 [1] : vector<5x5xf32> to vector<5xf32>
    %78 = vector.shape_cast %77 : vector<5xf32> to vector<5x1xf32>
    %79 = tpu.reciprocal %78 {approx = true} : vector<5x1xf32> -> vector<5x1xf32>
    %80 = vector.broadcast %79 : vector<5x1xf32> to vector<5x5xf32>
    %81 = arith.mulf %76, %80 : vector<5x5xf32>
    %cst_36 = arith.constant dense<0.000000e+00> : vector<5x16xf32>
    %82 = tpu.matmul %81, %68, %cst_36 {dimension_numbers = #tpu.dot_dimension_numbers<[1], [0], [0], [1], [0, 0, 1, 1], [], []>} : vector<5x5xf32>, vector<5x16xf32>, vector<5x16xf32> -> vector<5x16xf32>
    %83 = tpu.concatenate %65, %82 in 1 : vector<5x16xf32>, vector<5x16xf32> -> vector<5x32xf32>
    %84 = vector.extract_strided_slice %47 {offsets = [5, 0], sizes = [5, 96], strides = [1, 1]} : vector<10x96xf32> to vector<5x96xf32>
    %85 = vector.extract_strided_slice %84 {offsets = [0, 0], sizes = [5, 16], strides = [1, 1]} : vector<5x96xf32> to vector<5x16xf32>
    %86 = vector.extract_strided_slice %84 {offsets = [0, 32], sizes = [5, 16], strides = [1, 1]} : vector<5x96xf32> to vector<5x16xf32>
    %87 = vector.extract_strided_slice %84 {offsets = [0, 64], sizes = [5, 16], strides = [1, 1]} : vector<5x96xf32> to vector<5x16xf32>
    %cst_37 = arith.constant dense<0.000000e+00> : vector<5x5xf32>
    %88 = tpu.matmul %85, %86, %cst_37 {dimension_numbers = #tpu.dot_dimension_numbers<[1], [1], [0], [0], [0, 0, 1, 0], [], []>} : vector<5x16xf32>, vector<5x16xf32>, vector<5x5xf32> -> vector<5x5xf32>
    %cst_38 = arith.constant 2.500000e-01 : f32
    %89 = vector.broadcast %cst_38 : f32 to vector<5x5xf32>
    %90 = arith.mulf %88, %89 : vector<5x5xf32>
    %cst_39 = arith.constant dense<0xFF800000> : vector<5xf32>
    %91 = vector.multi_reduction <maximumf>, %90, %cst_39 [1] : vector<5x5xf32> to vector<5xf32>
    %92 = vector.shape_cast %91 : vector<5xf32> to vector<5x1xf32>
    %93 = vector.broadcast %92 : vector<5x1xf32> to vector<5x5xf32>
    %94 = arith.subf %90, %93 : vector<5x5xf32>
    %95 = math.exp %94 : vector<5x5xf32>
    %cst_40 = arith.constant dense<0.000000e+00> : vector<5xf32>
    %96 = vector.multi_reduction <add>, %95, %cst_40 [1] : vector<5x5xf32> to vector<5xf32>
    %97 = vector.shape_cast %96 : vector<5xf32> to vector<5x1xf32>
    %98 = tpu.reciprocal %97 {approx = true} : vector<5x1xf32> -> vector<5x1xf32>
    %99 = vector.broadcast %98 : vector<5x1xf32> to vector<5x5xf32>
    %100 = arith.mulf %95, %99 : vector<5x5xf32>
    %cst_41 = arith.constant dense<0.000000e+00> : vector<5x16xf32>
    %101 = tpu.matmul %100, %87, %cst_41 {dimension_numbers = #tpu.dot_dimension_numbers<[1], [0], [0], [1], [0, 0, 1, 1], [], []>} : vector<5x5xf32>, vector<5x16xf32>, vector<5x16xf32> -> vector<5x16xf32>
    %102 = vector.extract_strided_slice %84 {offsets = [0, 16], sizes = [5, 16], strides = [1, 1]} : vector<5x96xf32> to vector<5x16xf32>
    %103 = vector.extract_strided_slice %84 {offsets = [0, 48], sizes = [5, 16], strides = [1, 1]} : vector<5x96xf32> to vector<5x16xf32>
    %104 = vector.extract_strided_slice %84 {offsets = [0, 80], sizes = [5, 16], strides = [1, 1]} : vector<5x96xf32> to vector<5x16xf32>
    %cst_42 = arith.constant dense<0.000000e+00> : vector<5x5xf32>
    %105 = tpu.matmul %102, %103, %cst_42 {dimension_numbers = #tpu.dot_dimension_numbers<[1], [1], [0], [0], [0, 0, 1, 0], [], []>} : vector<5x16xf32>, vector<5x16xf32>, vector<5x5xf32> -> vector<5x5xf32>
    %cst_43 = arith.constant 2.500000e-01 : f32
    %106 = vector.broadcast %cst_43 : f32 to vector<5x5xf32>
    %107 = arith.mulf %105, %106 : vector<5x5xf32>
    %cst_44 = arith.constant dense<0xFF800000> : vector<5xf32>
    %108 = vector.multi_reduction <maximumf>, %107, %cst_44 [1] : vector<5x5xf32> to vector<5xf32>
    %109 = vector.shape_cast %108 : vector<5xf32> to vector<5x1xf32>
    %110 = vector.broadcast %109 : vector<5x1xf32> to vector<5x5xf32>
    %111 = arith.subf %107, %110 : vector<5x5xf32>
    %112 = math.exp %111 : vector<5x5xf32>
    %cst_45 = arith.constant dense<0.000000e+00> : vector<5xf32>
    %113 = vector.multi_reduction <add>, %112, %cst_45 [1] : vector<5x5xf32> to vector<5xf32>
    %114 = vector.shape_cast %113 : vector<5xf32> to vector<5x1xf32>
    %115 = tpu.reciprocal %114 {approx = true} : vector<5x1xf32> -> vector<5x1xf32>
    %116 = vector.broadcast %115 : vector<5x1xf32> to vector<5x5xf32>
    %117 = arith.mulf %112, %116 : vector<5x5xf32>
    %cst_46 = arith.constant dense<0.000000e+00> : vector<5x16xf32>
    %118 = tpu.matmul %117, %104, %cst_46 {dimension_numbers = #tpu.dot_dimension_numbers<[1], [0], [0], [1], [0, 0, 1, 1], [], []>} : vector<5x5xf32>, vector<5x16xf32>, vector<5x16xf32> -> vector<5x16xf32>
    %119 = tpu.concatenate %101, %118 in 1 : vector<5x16xf32>, vector<5x16xf32> -> vector<5x32xf32>
    %120 = tpu.concatenate %83, %119 in 0 : vector<5x32xf32>, vector<5x32xf32> -> vector<10x32xf32>
    %c0_47 = arith.constant 0 : index
    %c0_48 = arith.constant 0 : index
    %c0_49 = arith.constant 0 : index
    %121 = vector.load %arg9[%c0_47, %c0_48, %c0_49] : memref<2x32x32xf32, #tpu.memory_space<vmem>>, vector<1x32x32xf32>
    %122 = vector.shape_cast %121 : vector<1x32x32xf32> to vector<32x32xf32>
    %cst_50 = arith.constant dense<0.000000e+00> : vector<10x32xf32>
    %123 = tpu.matmul %120, %122, %cst_50 {dimension_numbers = #tpu.dot_dimension_numbers<[1], [0], [0], [1], [0, 0, 1, 1], [], []>} : vector<10x32xf32>, vector<32x32xf32>, vector<10x32xf32> -> vector<10x32xf32>
    %124 = arith.addf %14, %123 : vector<10x32xf32>
    %c0_51 = arith.constant 0 : index
    %c0_52 = arith.constant 0 : index
    %c0_53 = arith.constant 0 : index
    %125 = vector.load %arg10[%c0_51, %c0_52, %c0_53] : memref<2x1x32xf32, #tpu.memory_space<vmem>>, vector<1x1x32xf32>
    %126 = vector.shape_cast %125 : vector<1x1x32xf32> to vector<1x32xf32>
    %127 = vector.broadcast %126 : vector<1x32xf32> to vector<10x32xf32>
    %128 = arith.addf %124, %127 : vector<10x32xf32>
    %c0_54 = arith.constant 0 : index
    %c0_55 = arith.constant 0 : index
    %c0_56 = arith.constant 0 : index
    %129 = vector.load %arg11[%c0_54, %c0_55, %c0_56] : memref<2x1x32xf32, #tpu.memory_space<vmem>>, vector<1x1x32xf32>
    %130 = vector.shape_cast %129 : vector<1x1x32xf32> to vector<1x32xf32>
    %c0_57 = arith.constant 0 : index
    %c0_58 = arith.constant 0 : index
    %c0_59 = arith.constant 0 : index
    %131 = vector.load %arg12[%c0_57, %c0_58, %c0_59] : memref<2x1x32xf32, #tpu.memory_space<vmem>>, vector<1x1x32xf32>
    %132 = vector.shape_cast %131 : vector<1x1x32xf32> to vector<1x32xf32>
    %cst_60 = arith.constant dense<0.000000e+00> : vector<10xf32>
    %133 = vector.multi_reduction <add>, %128, %cst_60 [1] : vector<10x32xf32> to vector<10xf32>
    %134 = vector.shape_cast %133 : vector<10xf32> to vector<10x1xf32>
    %cst_61 = arith.constant 3.200000e+01 : f32
    %135 = vector.broadcast %cst_61 : f32 to vector<10x1xf32>
    %136 = arith.divf %134, %135 : vector<10x1xf32>
    %137 = vector.broadcast %136 : vector<10x1xf32> to vector<10x32xf32>
    %138 = arith.subf %128, %137 : vector<10x32xf32>
    %139 = arith.mulf %138, %138 : vector<10x32xf32>
    %cst_62 = arith.constant dense<0.000000e+00> : vector<10xf32>
    %140 = vector.multi_reduction <add>, %139, %cst_62 [1] : vector<10x32xf32> to vector<10xf32>
    %141 = vector.shape_cast %140 : vector<10xf32> to vector<10x1xf32>
    %cst_63 = arith.constant 3.200000e+01 : f32
    %142 = vector.broadcast %cst_63 : f32 to vector<10x1xf32>
    %143 = arith.divf %141, %142 : vector<10x1xf32>
    %144 = vector.broadcast %136 : vector<10x1xf32> to vector<10x32xf32>
    %145 = arith.subf %128, %144 : vector<10x32xf32>
    %cst_64 = arith.constant 9.99999997E-7 : f32
    %146 = vector.broadcast %cst_64 : f32 to vector<10x1xf32>
    %147 = arith.addf %143, %146 : vector<10x1xf32>
    %148 = math.rsqrt %147 : vector<10x1xf32>
    %149 = vector.broadcast %148 : vector<10x1xf32> to vector<10x32xf32>
    %150 = arith.mulf %145, %149 : vector<10x32xf32>
    %151 = vector.broadcast %130 : vector<1x32xf32> to vector<10x32xf32>
    %152 = arith.mulf %150, %151 : vector<10x32xf32>
    %153 = vector.broadcast %132 : vector<1x32xf32> to vector<10x32xf32>
    %154 = arith.addf %152, %153 : vector<10x32xf32>
    %c0_65 = arith.constant 0 : index
    %c0_66 = arith.constant 0 : index
    %c0_67 = arith.constant 0 : index
    %155 = vector.load %arg13[%c0_65, %c0_66, %c0_67] : memref<2x32x128xf32, #tpu.memory_space<vmem>>, vector<1x32x128xf32>
    %156 = vector.shape_cast %155 : vector<1x32x128xf32> to vector<32x128xf32>
    %cst_68 = arith.constant dense<0.000000e+00> : vector<10x128xf32>
    %157 = tpu.matmul %154, %156, %cst_68 {dimension_numbers = #tpu.dot_dimension_numbers<[1], [0], [0], [1], [0, 0, 1, 1], [], []>} : vector<10x32xf32>, vector<32x128xf32>, vector<10x128xf32> -> vector<10x128xf32>
    %c0_69 = arith.constant 0 : index
    %c0_70 = arith.constant 0 : index
    %c0_71 = arith.constant 0 : index
    %158 = vector.load %arg14[%c0_69, %c0_70, %c0_71] : memref<2x1x128xf32, #tpu.memory_space<vmem>>, vector<1x1x128xf32>
    %159 = vector.shape_cast %158 : vector<1x1x128xf32> to vector<1x128xf32>
    %160 = vector.broadcast %159 : vector<1x128xf32> to vector<10x128xf32>
    %161 = arith.addf %157, %160 : vector<10x128xf32>
    %cst_72 = arith.constant 5.000000e-01 : f32
    %162 = vector.broadcast %cst_72 : f32 to vector<10x128xf32>
    %163 = arith.mulf %162, %161 : vector<10x128xf32>
    %cst_73 = arith.constant 0.707106769 : f32
    %164 = vector.broadcast %cst_73 : f32 to vector<10x128xf32>
    %165 = arith.mulf %161, %164 : vector<10x128xf32>
    %166 = math.absf %165 : vector<10x128xf32>
    %cst_74 = arith.constant 0.327591091 : f32
    %167 = vector.broadcast %cst_74 : f32 to vector<10x128xf32>
    %168 = arith.mulf %167, %166 : vector<10x128xf32>
    %cst_75 = arith.constant 1.000000e+00 : f32
    %169 = vector.broadcast %cst_75 : f32 to vector<10x128xf32>
    %170 = arith.addf %169, %168 : vector<10x128xf32>
    %cst_76 = arith.constant 1.000000e+00 : f32
    %171 = vector.broadcast %cst_76 : f32 to vector<10x128xf32>
    %172 = arith.divf %171, %170 : vector<10x128xf32>
    %cst_77 = arith.constant 1.06140542 : f32
    %173 = vector.broadcast %cst_77 : f32 to vector<10x128xf32>
    %174 = arith.mulf %173, %172 : vector<10x128xf32>
    %cst_78 = arith.constant -1.45315206 : f32
    %175 = vector.broadcast %cst_78 : f32 to vector<10x128xf32>
    %176 = arith.addf %174, %175 : vector<10x128xf32>
    %177 = arith.mulf %176, %172 : vector<10x128xf32>
    %cst_79 = arith.constant 1.42141378 : f32
    %178 = vector.broadcast %cst_79 : f32 to vector<10x128xf32>
    %179 = arith.addf %177, %178 : vector<10x128xf32>
    %180 = arith.mulf %179, %172 : vector<10x128xf32>
    %cst_80 = arith.constant -0.284496725 : f32
    %181 = vector.broadcast %cst_80 : f32 to vector<10x128xf32>
    %182 = arith.addf %180, %181 : vector<10x128xf32>
    %183 = arith.mulf %182, %172 : vector<10x128xf32>
    %cst_81 = arith.constant 0.254829586 : f32
    %184 = vector.broadcast %cst_81 : f32 to vector<10x128xf32>
    %185 = arith.addf %183, %184 : vector<10x128xf32>
    %186 = arith.mulf %185, %172 : vector<10x128xf32>
    %cst_82 = arith.constant 0.000000e+00 : f32
    %187 = vector.broadcast %cst_82 : f32 to vector<10x128xf32>
    %188 = arith.subf %187, %166 : vector<10x128xf32>
    %189 = arith.mulf %188, %166 : vector<10x128xf32>
    %190 = math.exp %189 : vector<10x128xf32>
    %191 = arith.mulf %186, %190 : vector<10x128xf32>
    %cst_83 = arith.constant 1.000000e+00 : f32
    %192 = vector.broadcast %cst_83 : f32 to vector<10x128xf32>
    %193 = arith.subf %192, %191 : vector<10x128xf32>
    %cst_84 = arith.constant 0.000000e+00 : f32
    %194 = vector.broadcast %cst_84 : f32 to vector<10x128xf32>
    %195 = arith.cmpf olt, %165, %194 : vector<10x128xf32>
    %cst_85 = arith.constant 0.000000e+00 : f32
    %196 = vector.broadcast %cst_85 : f32 to vector<10x128xf32>
    %197 = arith.subf %196, %193 : vector<10x128xf32>
    %198 = arith.select %195, %197, %193 : vector<10x128xi1>, vector<10x128xf32>
    %cst_86 = arith.constant 1.000000e+00 : f32
    %199 = vector.broadcast %cst_86 : f32 to vector<10x128xf32>
    %200 = arith.addf %199, %198 : vector<10x128xf32>
    %201 = arith.mulf %163, %200 : vector<10x128xf32>
    %c0_87 = arith.constant 0 : index
    %c0_88 = arith.constant 0 : index
    %c0_89 = arith.constant 0 : index
    %202 = vector.load %arg15[%c0_87, %c0_88, %c0_89] : memref<2x128x32xf32, #tpu.memory_space<vmem>>, vector<1x128x32xf32>
    %203 = vector.shape_cast %202 : vector<1x128x32xf32> to vector<128x32xf32>
    %cst_90 = arith.constant dense<0.000000e+00> : vector<10x32xf32>
    %204 = tpu.matmul %201, %203, %cst_90 {dimension_numbers = #tpu.dot_dimension_numbers<[1], [0], [0], [1], [0, 0, 1, 1], [], []>} : vector<10x128xf32>, vector<128x32xf32>, vector<10x32xf32> -> vector<10x32xf32>
    %205 = arith.addf %128, %204 : vector<10x32xf32>
    %c0_91 = arith.constant 0 : index
    %c0_92 = arith.constant 0 : index
    %c0_93 = arith.constant 0 : index
    %206 = vector.load %arg16[%c0_91, %c0_92, %c0_93] : memref<2x1x32xf32, #tpu.memory_space<vmem>>, vector<1x1x32xf32>
    %207 = vector.shape_cast %206 : vector<1x1x32xf32> to vector<1x32xf32>
    %208 = vector.broadcast %207 : vector<1x32xf32> to vector<10x32xf32>
    %209 = arith.addf %205, %208 : vector<10x32xf32>
    %c1 = arith.constant 1 : index
    %c0_94 = arith.constant 0 : index
    %c0_95 = arith.constant 0 : index
    %210 = vector.load %arg5[%c1, %c0_94, %c0_95] : memref<2x1x32xf32, #tpu.memory_space<vmem>>, vector<1x1x32xf32>
    %211 = vector.shape_cast %210 : vector<1x1x32xf32> to vector<1x32xf32>
    %c1_96 = arith.constant 1 : index
    %c0_97 = arith.constant 0 : index
    %c0_98 = arith.constant 0 : index
    %212 = vector.load %arg6[%c1_96, %c0_97, %c0_98] : memref<2x1x32xf32, #tpu.memory_space<vmem>>, vector<1x1x32xf32>
    %213 = vector.shape_cast %212 : vector<1x1x32xf32> to vector<1x32xf32>
    %cst_99 = arith.constant dense<0.000000e+00> : vector<10xf32>
    %214 = vector.multi_reduction <add>, %209, %cst_99 [1] : vector<10x32xf32> to vector<10xf32>
    %215 = vector.shape_cast %214 : vector<10xf32> to vector<10x1xf32>
    %cst_100 = arith.constant 3.200000e+01 : f32
    %216 = vector.broadcast %cst_100 : f32 to vector<10x1xf32>
    %217 = arith.divf %215, %216 : vector<10x1xf32>
    %218 = vector.broadcast %217 : vector<10x1xf32> to vector<10x32xf32>
    %219 = arith.subf %209, %218 : vector<10x32xf32>
    %220 = arith.mulf %219, %219 : vector<10x32xf32>
    %cst_101 = arith.constant dense<0.000000e+00> : vector<10xf32>
    %221 = vector.multi_reduction <add>, %220, %cst_101 [1] : vector<10x32xf32> to vector<10xf32>
    %222 = vector.shape_cast %221 : vector<10xf32> to vector<10x1xf32>
    %cst_102 = arith.constant 3.200000e+01 : f32
    %223 = vector.broadcast %cst_102 : f32 to vector<10x1xf32>
    %224 = arith.divf %222, %223 : vector<10x1xf32>
    %225 = vector.broadcast %217 : vector<10x1xf32> to vector<10x32xf32>
    %226 = arith.subf %209, %225 : vector<10x32xf32>
    %cst_103 = arith.constant 9.99999997E-7 : f32
    %227 = vector.broadcast %cst_103 : f32 to vector<10x1xf32>
    %228 = arith.addf %224, %227 : vector<10x1xf32>
    %229 = math.rsqrt %228 : vector<10x1xf32>
    %230 = vector.broadcast %229 : vector<10x1xf32> to vector<10x32xf32>
    %231 = arith.mulf %226, %230 : vector<10x32xf32>
    %232 = vector.broadcast %211 : vector<1x32xf32> to vector<10x32xf32>
    %233 = arith.mulf %231, %232 : vector<10x32xf32>
    %234 = vector.broadcast %213 : vector<1x32xf32> to vector<10x32xf32>
    %235 = arith.addf %233, %234 : vector<10x32xf32>
    %c1_104 = arith.constant 1 : index
    %c0_105 = arith.constant 0 : index
    %c0_106 = arith.constant 0 : index
    %236 = vector.load %arg7[%c1_104, %c0_105, %c0_106] : memref<2x32x96xf32, #tpu.memory_space<vmem>>, vector<1x32x96xf32>
    %237 = vector.shape_cast %236 : vector<1x32x96xf32> to vector<32x96xf32>
    %cst_107 = arith.constant dense<0.000000e+00> : vector<10x96xf32>
    %238 = tpu.matmul %235, %237, %cst_107 {dimension_numbers = #tpu.dot_dimension_numbers<[1], [0], [0], [1], [0, 0, 1, 1], [], []>} : vector<10x32xf32>, vector<32x96xf32>, vector<10x96xf32> -> vector<10x96xf32>
    %c1_108 = arith.constant 1 : index
    %c0_109 = arith.constant 0 : index
    %c0_110 = arith.constant 0 : index
    %239 = vector.load %arg8[%c1_108, %c0_109, %c0_110] : memref<2x1x96xf32, #tpu.memory_space<vmem>>, vector<1x1x96xf32>
    %240 = vector.shape_cast %239 : vector<1x1x96xf32> to vector<1x96xf32>
    %241 = vector.broadcast %240 : vector<1x96xf32> to vector<10x96xf32>
    %242 = arith.addf %238, %241 : vector<10x96xf32>
    %243 = vector.extract_strided_slice %242 {offsets = [0, 0], sizes = [5, 96], strides = [1, 1]} : vector<10x96xf32> to vector<5x96xf32>
    %244 = vector.extract_strided_slice %243 {offsets = [0, 0], sizes = [5, 16], strides = [1, 1]} : vector<5x96xf32> to vector<5x16xf32>
    %245 = vector.extract_strided_slice %243 {offsets = [0, 32], sizes = [5, 16], strides = [1, 1]} : vector<5x96xf32> to vector<5x16xf32>
    %246 = vector.extract_strided_slice %243 {offsets = [0, 64], sizes = [5, 16], strides = [1, 1]} : vector<5x96xf32> to vector<5x16xf32>
    %cst_111 = arith.constant dense<0.000000e+00> : vector<5x5xf32>
    %247 = tpu.matmul %244, %245, %cst_111 {dimension_numbers = #tpu.dot_dimension_numbers<[1], [1], [0], [0], [0, 0, 1, 0], [], []>} : vector<5x16xf32>, vector<5x16xf32>, vector<5x5xf32> -> vector<5x5xf32>
    %cst_112 = arith.constant 2.500000e-01 : f32
    %248 = vector.broadcast %cst_112 : f32 to vector<5x5xf32>
    %249 = arith.mulf %247, %248 : vector<5x5xf32>
    %cst_113 = arith.constant dense<0xFF800000> : vector<5xf32>
    %250 = vector.multi_reduction <maximumf>, %249, %cst_113 [1] : vector<5x5xf32> to vector<5xf32>
    %251 = vector.shape_cast %250 : vector<5xf32> to vector<5x1xf32>
    %252 = vector.broadcast %251 : vector<5x1xf32> to vector<5x5xf32>
    %253 = arith.subf %249, %252 : vector<5x5xf32>
    %254 = math.exp %253 : vector<5x5xf32>
    %cst_114 = arith.constant dense<0.000000e+00> : vector<5xf32>
    %255 = vector.multi_reduction <add>, %254, %cst_114 [1] : vector<5x5xf32> to vector<5xf32>
    %256 = vector.shape_cast %255 : vector<5xf32> to vector<5x1xf32>
    %257 = tpu.reciprocal %256 {approx = true} : vector<5x1xf32> -> vector<5x1xf32>
    %258 = vector.broadcast %257 : vector<5x1xf32> to vector<5x5xf32>
    %259 = arith.mulf %254, %258 : vector<5x5xf32>
    %cst_115 = arith.constant dense<0.000000e+00> : vector<5x16xf32>
    %260 = tpu.matmul %259, %246, %cst_115 {dimension_numbers = #tpu.dot_dimension_numbers<[1], [0], [0], [1], [0, 0, 1, 1], [], []>} : vector<5x5xf32>, vector<5x16xf32>, vector<5x16xf32> -> vector<5x16xf32>
    %261 = vector.extract_strided_slice %243 {offsets = [0, 16], sizes = [5, 16], strides = [1, 1]} : vector<5x96xf32> to vector<5x16xf32>
    %262 = vector.extract_strided_slice %243 {offsets = [0, 48], sizes = [5, 16], strides = [1, 1]} : vector<5x96xf32> to vector<5x16xf32>
    %263 = vector.extract_strided_slice %243 {offsets = [0, 80], sizes = [5, 16], strides = [1, 1]} : vector<5x96xf32> to vector<5x16xf32>
    %cst_116 = arith.constant dense<0.000000e+00> : vector<5x5xf32>
    %264 = tpu.matmul %261, %262, %cst_116 {dimension_numbers = #tpu.dot_dimension_numbers<[1], [1], [0], [0], [0, 0, 1, 0], [], []>} : vector<5x16xf32>, vector<5x16xf32>, vector<5x5xf32> -> vector<5x5xf32>
    %cst_117 = arith.constant 2.500000e-01 : f32
    %265 = vector.broadcast %cst_117 : f32 to vector<5x5xf32>
    %266 = arith.mulf %264, %265 : vector<5x5xf32>
    %cst_118 = arith.constant dense<0xFF800000> : vector<5xf32>
    %267 = vector.multi_reduction <maximumf>, %266, %cst_118 [1] : vector<5x5xf32> to vector<5xf32>
    %268 = vector.shape_cast %267 : vector<5xf32> to vector<5x1xf32>
    %269 = vector.broadcast %268 : vector<5x1xf32> to vector<5x5xf32>
    %270 = arith.subf %266, %269 : vector<5x5xf32>
    %271 = math.exp %270 : vector<5x5xf32>
    %cst_119 = arith.constant dense<0.000000e+00> : vector<5xf32>
    %272 = vector.multi_reduction <add>, %271, %cst_119 [1] : vector<5x5xf32> to vector<5xf32>
    %273 = vector.shape_cast %272 : vector<5xf32> to vector<5x1xf32>
    %274 = tpu.reciprocal %273 {approx = true} : vector<5x1xf32> -> vector<5x1xf32>
    %275 = vector.broadcast %274 : vector<5x1xf32> to vector<5x5xf32>
    %276 = arith.mulf %271, %275 : vector<5x5xf32>
    %cst_120 = arith.constant dense<0.000000e+00> : vector<5x16xf32>
    %277 = tpu.matmul %276, %263, %cst_120 {dimension_numbers = #tpu.dot_dimension_numbers<[1], [0], [0], [1], [0, 0, 1, 1], [], []>} : vector<5x5xf32>, vector<5x16xf32>, vector<5x16xf32> -> vector<5x16xf32>
    %278 = tpu.concatenate %260, %277 in 1 : vector<5x16xf32>, vector<5x16xf32> -> vector<5x32xf32>
    %279 = vector.extract_strided_slice %242 {offsets = [5, 0], sizes = [5, 96], strides = [1, 1]} : vector<10x96xf32> to vector<5x96xf32>
    %280 = vector.extract_strided_slice %279 {offsets = [0, 0], sizes = [5, 16], strides = [1, 1]} : vector<5x96xf32> to vector<5x16xf32>
    %281 = vector.extract_strided_slice %279 {offsets = [0, 32], sizes = [5, 16], strides = [1, 1]} : vector<5x96xf32> to vector<5x16xf32>
    %282 = vector.extract_strided_slice %279 {offsets = [0, 64], sizes = [5, 16], strides = [1, 1]} : vector<5x96xf32> to vector<5x16xf32>
    %cst_121 = arith.constant dense<0.000000e+00> : vector<5x5xf32>
    %283 = tpu.matmul %280, %281, %cst_121 {dimension_numbers = #tpu.dot_dimension_numbers<[1], [1], [0], [0], [0, 0, 1, 0], [], []>} : vector<5x16xf32>, vector<5x16xf32>, vector<5x5xf32> -> vector<5x5xf32>
    %cst_122 = arith.constant 2.500000e-01 : f32
    %284 = vector.broadcast %cst_122 : f32 to vector<5x5xf32>
    %285 = arith.mulf %283, %284 : vector<5x5xf32>
    %cst_123 = arith.constant dense<0xFF800000> : vector<5xf32>
    %286 = vector.multi_reduction <maximumf>, %285, %cst_123 [1] : vector<5x5xf32> to vector<5xf32>
    %287 = vector.shape_cast %286 : vector<5xf32> to vector<5x1xf32>
    %288 = vector.broadcast %287 : vector<5x1xf32> to vector<5x5xf32>
    %289 = arith.subf %285, %288 : vector<5x5xf32>
    %290 = math.exp %289 : vector<5x5xf32>
    %cst_124 = arith.constant dense<0.000000e+00> : vector<5xf32>
    %291 = vector.multi_reduction <add>, %290, %cst_124 [1] : vector<5x5xf32> to vector<5xf32>
    %292 = vector.shape_cast %291 : vector<5xf32> to vector<5x1xf32>
    %293 = tpu.reciprocal %292 {approx = true} : vector<5x1xf32> -> vector<5x1xf32>
    %294 = vector.broadcast %293 : vector<5x1xf32> to vector<5x5xf32>
    %295 = arith.mulf %290, %294 : vector<5x5xf32>
    %cst_125 = arith.constant dense<0.000000e+00> : vector<5x16xf32>
    %296 = tpu.matmul %295, %282, %cst_125 {dimension_numbers = #tpu.dot_dimension_numbers<[1], [0], [0], [1], [0, 0, 1, 1], [], []>} : vector<5x5xf32>, vector<5x16xf32>, vector<5x16xf32> -> vector<5x16xf32>
    %297 = vector.extract_strided_slice %279 {offsets = [0, 16], sizes = [5, 16], strides = [1, 1]} : vector<5x96xf32> to vector<5x16xf32>
    %298 = vector.extract_strided_slice %279 {offsets = [0, 48], sizes = [5, 16], strides = [1, 1]} : vector<5x96xf32> to vector<5x16xf32>
    %299 = vector.extract_strided_slice %279 {offsets = [0, 80], sizes = [5, 16], strides = [1, 1]} : vector<5x96xf32> to vector<5x16xf32>
    %cst_126 = arith.constant dense<0.000000e+00> : vector<5x5xf32>
    %300 = tpu.matmul %297, %298, %cst_126 {dimension_numbers = #tpu.dot_dimension_numbers<[1], [1], [0], [0], [0, 0, 1, 0], [], []>} : vector<5x16xf32>, vector<5x16xf32>, vector<5x5xf32> -> vector<5x5xf32>
    %cst_127 = arith.constant 2.500000e-01 : f32
    %301 = vector.broadcast %cst_127 : f32 to vector<5x5xf32>
    %302 = arith.mulf %300, %301 : vector<5x5xf32>
    %cst_128 = arith.constant dense<0xFF800000> : vector<5xf32>
    %303 = vector.multi_reduction <maximumf>, %302, %cst_128 [1] : vector<5x5xf32> to vector<5xf32>
    %304 = vector.shape_cast %303 : vector<5xf32> to vector<5x1xf32>
    %305 = vector.broadcast %304 : vector<5x1xf32> to vector<5x5xf32>
    %306 = arith.subf %302, %305 : vector<5x5xf32>
    %307 = math.exp %306 : vector<5x5xf32>
    %cst_129 = arith.constant dense<0.000000e+00> : vector<5xf32>
    %308 = vector.multi_reduction <add>, %307, %cst_129 [1] : vector<5x5xf32> to vector<5xf32>
    %309 = vector.shape_cast %308 : vector<5xf32> to vector<5x1xf32>
    %310 = tpu.reciprocal %309 {approx = true} : vector<5x1xf32> -> vector<5x1xf32>
    %311 = vector.broadcast %310 : vector<5x1xf32> to vector<5x5xf32>
    %312 = arith.mulf %307, %311 : vector<5x5xf32>
    %cst_130 = arith.constant dense<0.000000e+00> : vector<5x16xf32>
    %313 = tpu.matmul %312, %299, %cst_130 {dimension_numbers = #tpu.dot_dimension_numbers<[1], [0], [0], [1], [0, 0, 1, 1], [], []>} : vector<5x5xf32>, vector<5x16xf32>, vector<5x16xf32> -> vector<5x16xf32>
    %314 = tpu.concatenate %296, %313 in 1 : vector<5x16xf32>, vector<5x16xf32> -> vector<5x32xf32>
    %315 = tpu.concatenate %278, %314 in 0 : vector<5x32xf32>, vector<5x32xf32> -> vector<10x32xf32>
    %c1_131 = arith.constant 1 : index
    %c0_132 = arith.constant 0 : index
    %c0_133 = arith.constant 0 : index
    %316 = vector.load %arg9[%c1_131, %c0_132, %c0_133] : memref<2x32x32xf32, #tpu.memory_space<vmem>>, vector<1x32x32xf32>
    %317 = vector.shape_cast %316 : vector<1x32x32xf32> to vector<32x32xf32>
    %cst_134 = arith.constant dense<0.000000e+00> : vector<10x32xf32>
    %318 = tpu.matmul %315, %317, %cst_134 {dimension_numbers = #tpu.dot_dimension_numbers<[1], [0], [0], [1], [0, 0, 1, 1], [], []>} : vector<10x32xf32>, vector<32x32xf32>, vector<10x32xf32> -> vector<10x32xf32>
    %319 = arith.addf %209, %318 : vector<10x32xf32>
    %c1_135 = arith.constant 1 : index
    %c0_136 = arith.constant 0 : index
    %c0_137 = arith.constant 0 : index
    %320 = vector.load %arg10[%c1_135, %c0_136, %c0_137] : memref<2x1x32xf32, #tpu.memory_space<vmem>>, vector<1x1x32xf32>
    %321 = vector.shape_cast %320 : vector<1x1x32xf32> to vector<1x32xf32>
    %322 = vector.broadcast %321 : vector<1x32xf32> to vector<10x32xf32>
    %323 = arith.addf %319, %322 : vector<10x32xf32>
    %c1_138 = arith.constant 1 : index
    %c0_139 = arith.constant 0 : index
    %c0_140 = arith.constant 0 : index
    %324 = vector.load %arg11[%c1_138, %c0_139, %c0_140] : memref<2x1x32xf32, #tpu.memory_space<vmem>>, vector<1x1x32xf32>
    %325 = vector.shape_cast %324 : vector<1x1x32xf32> to vector<1x32xf32>
    %c1_141 = arith.constant 1 : index
    %c0_142 = arith.constant 0 : index
    %c0_143 = arith.constant 0 : index
    %326 = vector.load %arg12[%c1_141, %c0_142, %c0_143] : memref<2x1x32xf32, #tpu.memory_space<vmem>>, vector<1x1x32xf32>
    %327 = vector.shape_cast %326 : vector<1x1x32xf32> to vector<1x32xf32>
    %cst_144 = arith.constant dense<0.000000e+00> : vector<10xf32>
    %328 = vector.multi_reduction <add>, %323, %cst_144 [1] : vector<10x32xf32> to vector<10xf32>
    %329 = vector.shape_cast %328 : vector<10xf32> to vector<10x1xf32>
    %cst_145 = arith.constant 3.200000e+01 : f32
    %330 = vector.broadcast %cst_145 : f32 to vector<10x1xf32>
    %331 = arith.divf %329, %330 : vector<10x1xf32>
    %332 = vector.broadcast %331 : vector<10x1xf32> to vector<10x32xf32>
    %333 = arith.subf %323, %332 : vector<10x32xf32>
    %334 = arith.mulf %333, %333 : vector<10x32xf32>
    %cst_146 = arith.constant dense<0.000000e+00> : vector<10xf32>
    %335 = vector.multi_reduction <add>, %334, %cst_146 [1] : vector<10x32xf32> to vector<10xf32>
    %336 = vector.shape_cast %335 : vector<10xf32> to vector<10x1xf32>
    %cst_147 = arith.constant 3.200000e+01 : f32
    %337 = vector.broadcast %cst_147 : f32 to vector<10x1xf32>
    %338 = arith.divf %336, %337 : vector<10x1xf32>
    %339 = vector.broadcast %331 : vector<10x1xf32> to vector<10x32xf32>
    %340 = arith.subf %323, %339 : vector<10x32xf32>
    %cst_148 = arith.constant 9.99999997E-7 : f32
    %341 = vector.broadcast %cst_148 : f32 to vector<10x1xf32>
    %342 = arith.addf %338, %341 : vector<10x1xf32>
    %343 = math.rsqrt %342 : vector<10x1xf32>
    %344 = vector.broadcast %343 : vector<10x1xf32> to vector<10x32xf32>
    %345 = arith.mulf %340, %344 : vector<10x32xf32>
    %346 = vector.broadcast %325 : vector<1x32xf32> to vector<10x32xf32>
    %347 = arith.mulf %345, %346 : vector<10x32xf32>
    %348 = vector.broadcast %327 : vector<1x32xf32> to vector<10x32xf32>
    %349 = arith.addf %347, %348 : vector<10x32xf32>
    %c1_149 = arith.constant 1 : index
    %c0_150 = arith.constant 0 : index
    %c0_151 = arith.constant 0 : index
    %350 = vector.load %arg13[%c1_149, %c0_150, %c0_151] : memref<2x32x128xf32, #tpu.memory_space<vmem>>, vector<1x32x128xf32>
    %351 = vector.shape_cast %350 : vector<1x32x128xf32> to vector<32x128xf32>
    %cst_152 = arith.constant dense<0.000000e+00> : vector<10x128xf32>
    %352 = tpu.matmul %349, %351, %cst_152 {dimension_numbers = #tpu.dot_dimension_numbers<[1], [0], [0], [1], [0, 0, 1, 1], [], []>} : vector<10x32xf32>, vector<32x128xf32>, vector<10x128xf32> -> vector<10x128xf32>
    %c1_153 = arith.constant 1 : index
    %c0_154 = arith.constant 0 : index
    %c0_155 = arith.constant 0 : index
    %353 = vector.load %arg14[%c1_153, %c0_154, %c0_155] : memref<2x1x128xf32, #tpu.memory_space<vmem>>, vector<1x1x128xf32>
    %354 = vector.shape_cast %353 : vector<1x1x128xf32> to vector<1x128xf32>
    %355 = vector.broadcast %354 : vector<1x128xf32> to vector<10x128xf32>
    %356 = arith.addf %352, %355 : vector<10x128xf32>
    %cst_156 = arith.constant 5.000000e-01 : f32
    %357 = vector.broadcast %cst_156 : f32 to vector<10x128xf32>
    %358 = arith.mulf %357, %356 : vector<10x128xf32>
    %cst_157 = arith.constant 0.707106769 : f32
    %359 = vector.broadcast %cst_157 : f32 to vector<10x128xf32>
    %360 = arith.mulf %356, %359 : vector<10x128xf32>
    %361 = math.absf %360 : vector<10x128xf32>
    %cst_158 = arith.constant 0.327591091 : f32
    %362 = vector.broadcast %cst_158 : f32 to vector<10x128xf32>
    %363 = arith.mulf %362, %361 : vector<10x128xf32>
    %cst_159 = arith.constant 1.000000e+00 : f32
    %364 = vector.broadcast %cst_159 : f32 to vector<10x128xf32>
    %365 = arith.addf %364, %363 : vector<10x128xf32>
    %cst_160 = arith.constant 1.000000e+00 : f32
    %366 = vector.broadcast %cst_160 : f32 to vector<10x128xf32>
    %367 = arith.divf %366, %365 : vector<10x128xf32>
    %cst_161 = arith.constant 1.06140542 : f32
    %368 = vector.broadcast %cst_161 : f32 to vector<10x128xf32>
    %369 = arith.mulf %368, %367 : vector<10x128xf32>
    %cst_162 = arith.constant -1.45315206 : f32
    %370 = vector.broadcast %cst_162 : f32 to vector<10x128xf32>
    %371 = arith.addf %369, %370 : vector<10x128xf32>
    %372 = arith.mulf %371, %367 : vector<10x128xf32>
    %cst_163 = arith.constant 1.42141378 : f32
    %373 = vector.broadcast %cst_163 : f32 to vector<10x128xf32>
    %374 = arith.addf %372, %373 : vector<10x128xf32>
    %375 = arith.mulf %374, %367 : vector<10x128xf32>
    %cst_164 = arith.constant -0.284496725 : f32
    %376 = vector.broadcast %cst_164 : f32 to vector<10x128xf32>
    %377 = arith.addf %375, %376 : vector<10x128xf32>
    %378 = arith.mulf %377, %367 : vector<10x128xf32>
    %cst_165 = arith.constant 0.254829586 : f32
    %379 = vector.broadcast %cst_165 : f32 to vector<10x128xf32>
    %380 = arith.addf %378, %379 : vector<10x128xf32>
    %381 = arith.mulf %380, %367 : vector<10x128xf32>
    %cst_166 = arith.constant 0.000000e+00 : f32
    %382 = vector.broadcast %cst_166 : f32 to vector<10x128xf32>
    %383 = arith.subf %382, %361 : vector<10x128xf32>
    %384 = arith.mulf %383, %361 : vector<10x128xf32>
    %385 = math.exp %384 : vector<10x128xf32>
    %386 = arith.mulf %381, %385 : vector<10x128xf32>
    %cst_167 = arith.constant 1.000000e+00 : f32
    %387 = vector.broadcast %cst_167 : f32 to vector<10x128xf32>
    %388 = arith.subf %387, %386 : vector<10x128xf32>
    %cst_168 = arith.constant 0.000000e+00 : f32
    %389 = vector.broadcast %cst_168 : f32 to vector<10x128xf32>
    %390 = arith.cmpf olt, %360, %389 : vector<10x128xf32>
    %cst_169 = arith.constant 0.000000e+00 : f32
    %391 = vector.broadcast %cst_169 : f32 to vector<10x128xf32>
    %392 = arith.subf %391, %388 : vector<10x128xf32>
    %393 = arith.select %390, %392, %388 : vector<10x128xi1>, vector<10x128xf32>
    %cst_170 = arith.constant 1.000000e+00 : f32
    %394 = vector.broadcast %cst_170 : f32 to vector<10x128xf32>
    %395 = arith.addf %394, %393 : vector<10x128xf32>
    %396 = arith.mulf %358, %395 : vector<10x128xf32>
    %c1_171 = arith.constant 1 : index
    %c0_172 = arith.constant 0 : index
    %c0_173 = arith.constant 0 : index
    %397 = vector.load %arg15[%c1_171, %c0_172, %c0_173] : memref<2x128x32xf32, #tpu.memory_space<vmem>>, vector<1x128x32xf32>
    %398 = vector.shape_cast %397 : vector<1x128x32xf32> to vector<128x32xf32>
    %cst_174 = arith.constant dense<0.000000e+00> : vector<10x32xf32>
    %399 = tpu.matmul %396, %398, %cst_174 {dimension_numbers = #tpu.dot_dimension_numbers<[1], [0], [0], [1], [0, 0, 1, 1], [], []>} : vector<10x128xf32>, vector<128x32xf32>, vector<10x32xf32> -> vector<10x32xf32>
    %400 = arith.addf %323, %399 : vector<10x32xf32>
    %c1_175 = arith.constant 1 : index
    %c0_176 = arith.constant 0 : index
    %c0_177 = arith.constant 0 : index
    %401 = vector.load %arg16[%c1_175, %c0_176, %c0_177] : memref<2x1x32xf32, #tpu.memory_space<vmem>>, vector<1x1x32xf32>
    %402 = vector.shape_cast %401 : vector<1x1x32xf32> to vector<1x32xf32>
    %403 = vector.broadcast %402 : vector<1x32xf32> to vector<10x32xf32>
    %404 = arith.addf %400, %403 : vector<10x32xf32>
    %405 = vector.extract_strided_slice %404 {offsets = [0, 0], sizes = [1, 32], strides = [1, 1]} : vector<10x32xf32> to vector<1x32xf32>
    %406 = vector.extract_strided_slice %404 {offsets = [5, 0], sizes = [1, 32], strides = [1, 1]} : vector<10x32xf32> to vector<1x32xf32>
    %407 = tpu.concatenate %405, %406 in 0 : vector<1x32xf32>, vector<1x32xf32> -> vector<2x32xf32>
    %c0_178 = arith.constant 0 : index
    %c0_179 = arith.constant 0 : index
    %408 = vector.load %arg17[%c0_178, %c0_179] : memref<1x32xf32, #tpu.memory_space<vmem>>, vector<1x32xf32>
    %c0_180 = arith.constant 0 : index
    %c0_181 = arith.constant 0 : index
    %409 = vector.load %arg18[%c0_180, %c0_181] : memref<1x32xf32, #tpu.memory_space<vmem>>, vector<1x32xf32>
    %cst_182 = arith.constant dense<0.000000e+00> : vector<2xf32>
    %410 = vector.multi_reduction <add>, %407, %cst_182 [1] : vector<2x32xf32> to vector<2xf32>
    %411 = vector.shape_cast %410 : vector<2xf32> to vector<2x1xf32>
    %cst_183 = arith.constant 3.200000e+01 : f32
    %412 = vector.broadcast %cst_183 : f32 to vector<2x1xf32>
    %413 = arith.divf %411, %412 : vector<2x1xf32>
    %414 = vector.broadcast %413 : vector<2x1xf32> to vector<2x32xf32>
    %415 = arith.subf %407, %414 : vector<2x32xf32>
    %416 = arith.mulf %415, %415 : vector<2x32xf32>
    %cst_184 = arith.constant dense<0.000000e+00> : vector<2xf32>
    %417 = vector.multi_reduction <add>, %416, %cst_184 [1] : vector<2x32xf32> to vector<2xf32>
    %418 = vector.shape_cast %417 : vector<2xf32> to vector<2x1xf32>
    %cst_185 = arith.constant 3.200000e+01 : f32
    %419 = vector.broadcast %cst_185 : f32 to vector<2x1xf32>
    %420 = arith.divf %418, %419 : vector<2x1xf32>
    %421 = vector.broadcast %413 : vector<2x1xf32> to vector<2x32xf32>
    %422 = arith.subf %407, %421 : vector<2x32xf32>
    %cst_186 = arith.constant 9.99999997E-7 : f32
    %423 = vector.broadcast %cst_186 : f32 to vector<2x1xf32>
    %424 = arith.addf %420, %423 : vector<2x1xf32>
    %425 = math.rsqrt %424 : vector<2x1xf32>
    %426 = vector.broadcast %425 : vector<2x1xf32> to vector<2x32xf32>
    %427 = arith.mulf %422, %426 : vector<2x32xf32>
    %428 = vector.broadcast %408 : vector<1x32xf32> to vector<2x32xf32>
    %429 = arith.mulf %427, %428 : vector<2x32xf32>
    %430 = vector.broadcast %409 : vector<1x32xf32> to vector<2x32xf32>
    %431 = arith.addf %429, %430 : vector<2x32xf32>
    %c0_187 = arith.constant 0 : index
    %c0_188 = arith.constant 0 : index
    %432 = vector.load %arg19[%c0_187, %c0_188] : memref<32x5xf32, #tpu.memory_space<vmem>>, vector<32x5xf32>
    %cst_189 = arith.constant dense<0.000000e+00> : vector<2x5xf32>
    %433 = tpu.matmul %431, %432, %cst_189 {dimension_numbers = #tpu.dot_dimension_numbers<[1], [0], [0], [1], [0, 0, 1, 1], [], []>} : vector<2x32xf32>, vector<32x5xf32>, vector<2x5xf32> -> vector<2x5xf32>
    %c0_190 = arith.constant 0 : index
    %c0_191 = arith.constant 0 : index
    %434 = vector.load %arg20[%c0_190, %c0_191] : memref<1x5xf32, #tpu.memory_space<vmem>>, vector<1x5xf32>
    %435 = vector.broadcast %434 : vector<1x5xf32> to vector<2x5xf32>
    %436 = arith.addf %433, %435 : vector<2x5xf32>
    %c0_192 = arith.constant 0 : index
    %c0_193 = arith.constant 0 : index
    %437 = vector.load %arg21[%c0_192, %c0_193] : memref<2x5xf32, #tpu.memory_space<vmem>>, vector<2x5xf32>
    tpu.vector_store %arg21[%c0_192, %c0_193], %436 {strides = array<i32>} : memref<2x5xf32, #tpu.memory_space<vmem>>, vector<2x5xf32>,
    return
  }
}

</mosaic_0001>

<bundles_post_ra>
// kernel: vit_forward.1
= control target key start
LH: loop header
LB: loop body
LE: loop exit
PB: predicated region body
PF: predicated region fallthrough
CT: control target
= control target key end

     0   :  { %s4513_s0 = inlined_call_operand.vmem [shape: f32[8,768], index: 0, kind: input, shape index: {}]   ;;  %s4514_s1 = inlined_call_operand.vmem [shape: f32[768,32], index: 1, kind: input, shape index: {}]   ;;  %s4515_s2 = inlined_call_operand.vmem [shape: f32[1,32], index: 2, kind: input, shape index: {}]   ;;  %s4516_s3 = inlined_call_operand.vmem [shape: f32[1,32], index: 3, kind: input, shape index: {}]   ;;  %s4517_s4 = inlined_call_operand.vmem [shape: f32[5,32], index: 4, kind: input, shape index: {}]   ;;  %s4518_s5 = inlined_call_operand.vmem [shape: f32[2,1,32], index: 5, kind: input, shape index: {}]   ;;  %s4519_s6 = inlined_call_operand.vmem [shape: f32[2,1,32], index: 6, kind: input, shape index: {}]   ;;  %s4520_s7 = inlined_call_operand.vmem [shape: f32[2,32,96], index: 7, kind: input, shape index: {}]   ;;  %s4521_s8 = inlined_call_operand.vmem [shape: f32[2,1,96], index: 8, kind: input, shape index: {}]   ;;  %s4522_s9 = inlined_call_operand.vmem [shape: f32[2,32,32], index: 9, kind: input, shape index: {}]   ;;  %s4523_s10 = inlined_call_operand.vmem [shape: f32[2,1,32], index: 10, kind: input, shape index: {}]   ;;  %s4524_s11 = inlined_call_operand.vmem [shape: f32[2,1,32], index: 11, kind: input, shape index: {}]   ;;  %s4525_s12 = inlined_call_operand.vmem [shape: f32[2,1,32], index: 12, kind: input, shape index: {}]   ;;  %s4526_s13 = inlined_call_operand.vmem [shape: f32[2,32,128], index: 13, kind: input, shape index: {}]   ;;  %s4527_s14 = inlined_call_operand.vmem [shape: f32[2,1,128], index: 14, kind: input, shape index: {}]   ;;  %s4528_s15 = inlined_call_operand.vmem [shape: f32[2,128,32], index: 15, kind: input, shape index: {}]   ;;  %s4529_s16 = inlined_call_operand.vmem [shape: f32[2,1,32], index: 16, kind: input, shape index: {}]   ;;  %s4530_s17 = inlined_call_operand.vmem [shape: f32[1,32], index: 17, kind: input, shape index: {}]   ;;  %s4531_s18 = inlined_call_operand.vmem [shape: f32[1,32], index: 18, kind: input, shape index: {}]   ;;  %s4532_s19 = inlined_call_operand.vmem [shape: f32[32,5], index: 19, kind: input, shape index: {}]   ;;  %s4533_s20 = inlined_call_operand.vmem [shape: f32[1,5], index: 20, kind: input, shape index: {}]   ;;  %s4534_s21 = inlined_call_operand.hbm [shape: f32[2,5], index: 21, kind: output, shape index: {}]  }
   0x1   :  { %4538 = sst [smem:[#allocation5_spill]] %s4513_s0 }
   0x2   :  { %4539 = sst [smem:[#allocation6_spill]] %s4514_s1 }
   0x3   :  { %4540 = sst [smem:[#allocation7_spill]] %s4515_s2 }
   0x4   :  { %4541 = sst [smem:[#allocation8_spill]] %s4516_s3 }
   0x5   :  { %4542 = sst [smem:[#allocation9_spill]] %s4517_s4 }
   0x6   :  { %4543 = sst [smem:[#allocation10_spill]] %s4518_s5 }
   0x7   :  { %s4544_s26 = sld [smem:[#allocation6_spill]] }
   0x8   :  { %s4545_s22 = sld [smem:[#allocation5_spill]] }
   0xd   :  { %v106_v0 = vld [vmem:[%s4544_s26 + $0xf8] sm:$0xff]  ;;  %v105_v2 = vld [vmem:[%s4544_s26 + $0xf0] sm:$0xff]  ;;  %v104_v6 = vld [vmem:[%s4544_s26 + $0xe8] sm:$0xff] }
   0xe   :  { %v90_v1 = vld [vmem:[%s4544_s26 + $0x78] sm:$0xff]  ;;  %3067 = vmatprep.subr.mxu0 %v106_v0  ;;  %v89_v4 = vld [vmem:[%s4544_s26 + $0x70] sm:$0xff]  ;;  %v88_v8 = vld [vmem:[%s4544_s26 + $0x68] sm:$0xff] }
   0xf   :  { %v138_v3 = vld [vmem:[%s4544_s26 + $0x1f8] sm:$0xff]  ;;  %3068 = vmatpush3.msra.mxu0 %v90_v1  ;;  %v137_v7 = vld [vmem:[%s4544_s26 + $0x1f0] sm:$0xff]  ;;  %v136_v10 = vld [vmem:[%s4544_s26 + $0x1e8] sm:$0xff] }
  0x10   :  { %v122_v5 = vld [vmem:[%s4544_s26 + $0x178] sm:$0xff]  ;;  %3102 = vmatprep.subr.mxu1 %v138_v3  ;;  %3069 = vmatprep.subr.mxu0 %v105_v2  ;;  %v121_v9 = vld [vmem:[%s4544_s26 + $0x170] sm:$0xff]  ;;  %v103_v11 = vld [vmem:[%s4544_s26 + $0xe0] sm:$0xff] }
  0x11   :  { %3103 = vmatpush3.msra.mxu1 %v122_v5  ;;  %3070 = vmatpush3.msra.mxu0 %v89_v4  ;;  %v120_v12 = vld [vmem:[%s4544_s26 + $0x168] sm:$0xff]  ;;  %v87_v13 = vld [vmem:[%s4544_s26 + $0x60] sm:$0xff]  ;;  %v102_v15 = vld [vmem:[%s4544_s26 + $0xd8] sm:$0xff] }
  0x12   :  { %3104 = vmatprep.subr.mxu1 %v137_v7  ;;  %3071 = vmatprep.subr.mxu0 %v104_v6  ;;  %v135_v14 = vld [vmem:[%s4544_s26 + $0x1e0] sm:$0xff]  ;;  %v86_v17 = vld [vmem:[%s4544_s26 + $0x58] sm:$0xff]  ;;  %v101_v19 = vld [vmem:[%s4544_s26 + $0xd0] sm:$0xff] }
  0x13   :  { %3105 = vmatpush3.msra.mxu1 %v121_v9  ;;  %3072 = vmatpush3.msra.mxu0 %v88_v8  ;;  %v119_v16 = vld [vmem:[%s4544_s26 + $0x160] sm:$0xff]  ;;  %v134_v18 = vld [vmem:[%s4544_s26 + $0x1d8] sm:$0xff]  ;;  %v85_v21 = vld [vmem:[%s4544_s26 + $0x50] sm:$0xff] }
  0x14   :  { %3106 = vmatprep.subr.mxu1 %v136_v10  ;;  %3073 = vmatprep.subr.mxu0 %v103_v11  ;;  %v118_v20 = vld [vmem:[%s4544_s26 + $0x158] sm:$0xff]  ;;  %v133_v22 = vld [vmem:[%s4544_s26 + $0x1d0] sm:$0xff]  ;;  %v100_v23 = vld [vmem:[%s4544_s26 + $0xc8] sm:$0xff] }
  0x15   :  { %3107 = vmatpush3.msra.mxu1 %v120_v12  ;;  %3074 = vmatpush3.msra.mxu0 %v87_v13  ;;  %v117_v24 = vld [vmem:[%s4544_s26 + $0x150] sm:$0xff]  ;;  %v84_v25 = vld [vmem:[%s4544_s26 + $0x48] sm:$0xff]  ;;  %v99_v27 = vld [vmem:[%s4544_s26 + $0xc0] sm:$0xff] }
  0x16   :  { %3108 = vmatprep.subr.mxu1 %v135_v14  ;;  %3075 = vmatprep.subr.mxu0 %v102_v15  ;;  %v132_v26 = vld [vmem:[%s4544_s26 + $0x1c8] sm:$0xff]  ;;  %v83_v29 = vld [vmem:[%s4544_s26 + $0x40] sm:$0xff]  ;;  %v98_v31 = vld [vmem:[%s4544_s26 + $0xb8] sm:$0xff] }
  0x17   :  { %3109 = vmatpush3.msra.mxu1 %v119_v16  ;;  %3076 = vmatpush3.msra.mxu0 %v86_v17  ;;  %v116_v28 = vld [vmem:[%s4544_s26 + $0x148] sm:$0xff]  ;;  %v131_v30 = vld [vmem:[%s4544_s26 + $0x1c0] sm:$0xff]  ;;  %v82_v33 = vld [vmem:[%s4544_s26 + $0x38] sm:$0xff] }
  0x18   :  { %3110 = vmatprep.subr.mxu1 %v134_v18  ;;  %3077 = vmatprep.subr.mxu0 %v101_v19  ;;  %v115_v32 = vld [vmem:[%s4544_s26 + $0x140] sm:$0xff]  ;;  %v130_v34 = vld [vmem:[%s4544_s26 + $0x1b8] sm:$0xff]  ;;  %v97_v35 = vld [vmem:[%s4544_s26 + $0xb0] sm:$0xff] }
  0x19   :  { %3111 = vmatpush3.msra.mxu1 %v118_v20  ;;  %3078 = vmatpush3.msra.mxu0 %v85_v21  ;;  %v114_v36 = vld [vmem:[%s4544_s26 + $0x138] sm:$0xff]  ;;  %v81_v37 = vld [vmem:[%s4544_s26 + $0x30] sm:$0xff]  ;;  %v96_v39 = vld [vmem:[%s4544_s26 + $0xa8] sm:$0xff] }
  0x1a   :  { %3112 = vmatprep.subr.mxu1 %v133_v22  ;;  %3079 = vmatprep.subr.mxu0 %v100_v23  ;;  %v129_v38 = vld [vmem:[%s4544_s26 + $0x1b0] sm:$0xff]  ;;  %v80_v41 = vld [vmem:[%s4544_s26 + $0x28] sm:$0xff]  ;;  %v95_v43 = vld [vmem:[%s4544_s26 + $0xa0] sm:$0xff] }
  0x1b   :  { %3113 = vmatpush3.msra.mxu1 %v117_v24  ;;  %3080 = vmatpush3.msra.mxu0 %v84_v25  ;;  %v113_v40 = vld [vmem:[%s4544_s26 + $0x130] sm:$0xff]  ;;  %v128_v42 = vld [vmem:[%s4544_s26 + $0x1a8] sm:$0xff]  ;;  %v79_v45 = vld [vmem:[%s4544_s26 + $0x20] sm:$0xff] }
  0x1c   :  { %3114 = vmatprep.subr.mxu1 %v132_v26  ;;  %3081 = vmatprep.subr.mxu0 %v99_v27  ;;  %v112_v44 = vld [vmem:[%s4544_s26 + $0x128] sm:$0xff]  ;;  %v127_v46 = vld [vmem:[%s4544_s26 + $0x1a0] sm:$0xff]  ;;  %v94_v47 = vld [vmem:[%s4544_s26 + $0x98] sm:$0xff] }
  0x1d   :  { %3115 = vmatpush3.msra.mxu1 %v116_v28  ;;  %3082 = vmatpush3.msra.mxu0 %v83_v29  ;;  %v111_v48 = vld [vmem:[%s4544_s26 + $0x120] sm:$0xff]  ;;  %v78_v49 = vld [vmem:[%s4544_s26 + $0x18] sm:$0xff]  ;;  %v93_v51 = vld [vmem:[%s4544_s26 + $0x90] sm:$0xff] }
  0x1e   :  { %3116 = vmatprep.subr.mxu1 %v131_v30  ;;  %3083 = vmatprep.subr.mxu0 %v98_v31  ;;  %v126_v50 = vld [vmem:[%s4544_s26 + $0x198] sm:$0xff]  ;;  %v77_v53 = vld [vmem:[%s4544_s26 + $0x10] sm:$0xff]  ;;  %v92_v55 = vld [vmem:[%s4544_s26 + $0x88] sm:$0xff] }
  0x1f   :  { %3117 = vmatpush3.msra.mxu1 %v115_v32  ;;  %3084 = vmatpush3.msra.mxu0 %v82_v33  ;;  %v110_v52 = vld [vmem:[%s4544_s26 + $0x118] sm:$0xff]  ;;  %v125_v54 = vld [vmem:[%s4544_s26 + $0x190] sm:$0xff]  ;;  %v76_v57 = vld [vmem:[%s4544_s26 + $0x8] sm:$0xff] }
  0x20   :  { %3118 = vmatprep.subr.mxu1 %v130_v34  ;;  %3085 = vmatprep.subr.mxu0 %v97_v35  ;;  %v109_v56 = vld [vmem:[%s4544_s26 + $0x110] sm:$0xff]  ;;  %v124_v58 = vld [vmem:[%s4544_s26 + $0x188] sm:$0xff]  ;;  %v91_v59 = vld [vmem:[%s4544_s26 + $0x80] sm:$0xff] }
  0x21   :  { %3119 = vmatpush3.msra.mxu1 %v114_v36  ;;  %3086 = vmatpush3.msra.mxu0 %v81_v37  ;;  %v70_v60 = vld [vmem:[%s4545_s22 + $0x8] sm:$0xff]  ;;  %v75_v61 = vld [vmem:[%s4544_s26] sm:$0xff]  ;;  %v170_v1 = vld [vmem:[%s4544_s26 + $0x2f8] sm:$0xff] }
  0x22   :  { %3120 = vmatprep.subr.mxu1 %v129_v38  ;;  %3087 = vmatprep.subr.mxu0 %v96_v39  ;;  %v108_v62 = vld [vmem:[%s4544_s26 + $0x108] sm:$0xff]  ;;  %v69_v63 = vld [vmem:[%s4545_s22] sm:$0xff]  ;;  %v72_v3 = vld [vmem:[%s4545_s22 + $0x18] sm:$0xff] }
  0x23   :  { %3121 = vmatpush3.msra.mxu1 %v113_v40  ;;  %3088 = vmatpush3.msra.mxu0 %v80_v41  ;;  %v123_v0 = vld [vmem:[%s4544_s26 + $0x180] sm:$0xff]  ;;  %v154_v4 = vld [vmem:[%s4544_s26 + $0x278] sm:$0xff]  ;;  %v71_v5 = vld [vmem:[%s4545_s22 + $0x10] sm:$0xff] }
  0x24   :  { %3122 = vmatprep.subr.mxu1 %v128_v42  ;;  %3089 = vmatprep.subr.mxu0 %v95_v43  ;;  %v107_v2 = vld [vmem:[%s4544_s26 + $0x100] sm:$0xff]  ;;  %v169_v6 = vld [vmem:[%s4544_s26 + $0x2f0] sm:$0xff]  ;;  %v74_v8 = vld [vmem:[%s4545_s22 + $0x28] sm:$0xff] }
  0x25   :  { %3123 = vmatpush3.msra.mxu1 %v112_v44  ;;  %3090 = vmatpush3.msra.mxu0 %v79_v45  ;;  %v153_v7 = vld [vmem:[%s4544_s26 + $0x270] sm:$0xff] }
  0x26   :  { %3124 = vmatprep.subr.mxu1 %v127_v46  ;;  %3091 = vmatprep.subr.mxu0 %v94_v47 }
  0x27   :  { %3125 = vmatpush3.msra.mxu1 %v111_v48  ;;  %3092 = vmatpush3.msra.mxu0 %v78_v49 }
  0x28   :  { %3126 = vmatprep.subr.mxu1 %v126_v50  ;;  %3093 = vmatprep.subr.mxu0 %v93_v51 }
  0x29   :  { %3127 = vmatpush3.msra.mxu1 %v110_v52  ;;  %3094 = vmatpush3.msra.mxu0 %v77_v53 }
  0x2a   :  { %3128 = vmatprep.subr.mxu1 %v125_v54  ;;  %3095 = vmatprep.subr.mxu0 %v92_v55 }
  0x2b   :  { %3129 = vmatpush3.msra.mxu1 %v109_v56  ;;  %3096 = vmatpush3.msra.mxu0 %v76_v57 }
  0x2c   :  { %3130 = vmatprep.subr.mxu1 %v124_v58  ;;  %3097 = vmatprep.subr.mxu0 %v91_v59 }
  0x2d   :  { %242 = vmatprep.mubr.f32.mxu0 %v70_v60  ;;  %3098 = vmatpush3.msra.mxu0 %v75_v61 }
  0x2e   :  { %3131 = vmatpush3.msra.mxu1 %v108_v62  ;;  %243 = vmatmul.mubr.f32.vlgmr.msra.gmra.mxu0 %v69_v63 }
  0x2f   :  { %3132 = vmatprep.subr.mxu1 %v123_v0  ;;  %3137 = vmatprep.subr.mxu0 %v170_v1 }
  0x30   :  { %3133 = vmatpush3.msra.mxu1 %v107_v2 }
  0x31   :  { %26 = vsyncpa [#allocation3], 0  ;;  %312 = vmatprep.mubr.f32.mxu1 %v72_v3  ;;  %3138 = vmatpush3.msra.mxu0 %v154_v4  ;;  %v168_v9 = vld [vmem:[%s4544_s26 + $0x2e8] sm:$0xff]  ;;  %v167_v11 = vld [vmem:[%s4544_s26 + $0x2e0] sm:$0xff]  ;;  %s4546_s3 = sld [smem:[#allocation7_spill]]  ;;  %vm393_vm0 = vcmask 1040384  }
  0x32   :  { %313 = vmatmul.mubr.f32.vlgmr.msra.gmra.mxu1 %v71_v5  ;;  %3139 = vmatprep.subr.mxu0 %v169_v6  ;;  %v152_v10 = vld [vmem:[%s4544_s26 + $0x268] sm:$0xff]  ;;  %v151_v12 = vld [vmem:[%s4544_s26 + $0x260] sm:$0xff]  ;;  %v166_v13 = vld [vmem:[%s4544_s26 + $0x2d8] sm:$0xff]  ;;  %s4547_s28 = sld [smem:[#allocation8_spill]]  ;;  %vm403_vm1 = vcmask 1044480   ;;  %vm407_vm2 = vcmask 261120  }
  0x33   :  { %3140 = vmatpush3.msra.mxu0 %v153_v7  ;;  %382 = vmatprep.mubr.f32.mxu0 %v74_v8  ;;  %v150_v14 = vld [vmem:[%s4544_s26 + $0x258] sm:$0xff]  ;;  %v165_v15 = vld [vmem:[%s4544_s26 + $0x2d0] sm:$0xff]  ;;  %v164_v17 = vld [vmem:[%s4544_s26 + $0x2c8] sm:$0xff]  ;;  %s4548_s4 = sld [smem:[#allocation9_spill]]  ;;  %vm411_vm3 = vcmask 254976   ;;  %vm3606_vm4 = vmmov 0  }
  0x34   :  { %3141 = vmatprep.subr.mxu0 %v168_v9  ;;  %v149_v16 = vld [vmem:[%s4544_s26 + $0x250] sm:$0xff]  ;;  %v148_v18 = vld [vmem:[%s4544_s26 + $0x248] sm:$0xff]  ;;  %v163_v19 = vld [vmem:[%s4544_s26 + $0x2c0] sm:$0xff]  ;;  %s3607_s30 = smov 96   ;;  %s3608_s5 = smov 80   ;;  %vm547_vm5 = vcmask 130048  }
  0x35   :  { %3142 = vmatpush3.msra.mxu0 %v152_v10  ;;  %v147_v20 = vld [vmem:[%s4544_s26 + $0x240] sm:$0xff]  ;;  %v162_v21 = vld [vmem:[%s4544_s26 + $0x2b8] sm:$0xff]  ;;  %v161_v23 = vld [vmem:[%s4544_s26 + $0x2b0] sm:$0xff]  ;;  %vm623_vm6 = vcmask 36864   ;;  %s3609_s23 = smov 64   ;;  %s3610_s1 = smov 112  }
  0x36   :  { %3143 = vmatprep.subr.mxu0 %v167_v11  ;;  %v146_v22 = vld [vmem:[%s4544_s26 + $0x238] sm:$0xff]  ;;  %v145_v24 = vld [vmem:[%s4544_s26 + $0x230] sm:$0xff]  ;;  %v160_v25 = vld [vmem:[%s4544_s26 + $0x2a8] sm:$0xff]  ;;  %vm637_vm7 = vcmask 39936   ;;  %s3611_s24 = smov 48   ;;  %vm886_vm8 = vcmask 1042432  }
  0x37   :  { %3144 = vmatpush3.msra.mxu0 %v151_v12  ;;  %v144_v26 = vld [vmem:[%s4544_s26 + $0x228] sm:$0xff]  ;;  %v159_v27 = vld [vmem:[%s4544_s26 + $0x2a0] sm:$0xff]  ;;  %v158_v29 = vld [vmem:[%s4544_s26 + $0x298] sm:$0xff]  ;;  %vm2950_vm13 = vcmask 33792  }
  0x38   :  { %3145 = vmatprep.subr.mxu0 %v166_v13  ;;  %v143_v28 = vld [vmem:[%s4544_s26 + $0x220] sm:$0xff]  ;;  %v142_v30 = vld [vmem:[%s4544_s26 + $0x218] sm:$0xff]  ;;  %v157_v31 = vld [vmem:[%s4544_s26 + $0x290] sm:$0xff] }
  0x39   :  { %3146 = vmatpush3.msra.mxu0 %v150_v14  ;;  %v141_v32 = vld [vmem:[%s4544_s26 + $0x210] sm:$0xff]  ;;  %v156_v33 = vld [vmem:[%s4544_s26 + $0x288] sm:$0xff]  ;;  %v155_v35 = vld [vmem:[%s4544_s26 + $0x280] sm:$0xff] }
  0x3a   :  { %3147 = vmatprep.subr.mxu0 %v165_v15  ;;  %v140_v34 = vld [vmem:[%s4544_s26 + $0x208] sm:$0xff]  ;;  %v139_v36 = vld [vmem:[%s4544_s26 + $0x200] sm:$0xff]  ;;  %v455_v9 = vld [vmem:[%s4520_s7 + $0x18] sm:$0xff] }
  0x3b   :  { %3148 = vmatpush3.msra.mxu0 %v149_v16  ;;  %v73_v37 = vld [vmem:[%s4545_s22 + $0x20] sm:$0xff]  ;;  %v454_v10 = vld [vmem:[%s4520_s7 + $0x10] sm:$0xff]  ;;  %3281 = vmatprep.subr.mxu1 %v455_v9  ;;  %v453_v11 = vld [vmem:[%s4520_s7 + $0x8] sm:$0xff]  ;;  %s4549_s22 = sld [smem:[#allocation10_spill]] }
  0x3c   :  { %3149 = vmatprep.subr.mxu0 %v164_v17  ;;  %v2966_v42 = vld [vmem:[%s4546_s3] ss:$0 sm:$0xff]  ;;  %3282 = vmatpush3.msra.mxu1 %v455_v9 }
  0x3d   :  { %3150 = vmatpush3.msra.mxu0 %v148_v18  ;;  %v388_v51 = vld [vmem:[%s4547_s28] sm:$0x1]  ;;  %3283 = vmatprep.subr.mxu1 %v454_v10 }
  0x3e   :  { %3151 = vmatprep.subr.mxu0 %v163_v19  ;;  %v389_v54 = vld [vmem:[%s4548_s4] sm:$0x1f]  ;;  %3284 = vmatpush3.msra.mxu1 %v454_v10  ;;  %s3612_s4 = smov 16  }
  0x3f   :  { %3152 = vmatpush3.msra.mxu0 %v147_v20  ;;  %3285 = vmatprep.subr.mxu1 %v453_v11  ;;  %v452_v12 = vld [vmem:[%s4520_s7] sm:$0xff] }
  0x40   :  { %3153 = vmatprep.subr.mxu0 %v162_v21  ;;  %3286 = vmatpush3.msra.mxu1 %v453_v11 }
  0x41   :  { %3154 = vmatpush3.msra.mxu0 %v146_v22  ;;  %3287 = vmatprep.subr.mxu1 %v452_v12  ;;  %v2967_v20 = vld [vmem:[%s4549_s22] ss:$0 sm:$0xff] }
  0x42   :  { %3155 = vmatprep.subr.mxu0 %v161_v23  ;;  %3288 = vmatpush3.msra.mxu1 %v452_v12  ;;  %v2968_v22 = vld [vmem:[%s4519_s6] ss:$0 sm:$0xff] }
  0x43   :  { %3156 = vmatpush3.msra.mxu0 %v145_v24 }
  0x44   :  { %3157 = vmatprep.subr.mxu0 %v160_v25 }
  0x45   :  { %3158 = vmatpush3.msra.mxu0 %v144_v26 }
  0x46   :  { %3159 = vmatprep.subr.mxu0 %v159_v27 }
  0x47   :  { %3160 = vmatpush3.msra.mxu0 %v143_v28 }
  0x48   :  { %3161 = vmatprep.subr.mxu0 %v158_v29  ;;  %v3605_v29 = vmov 0.0  }
  0x49   :  { %3162 = vmatpush3.msra.mxu0 %v142_v30  ;;  %3292 = vmatprep.subr.mxu1 %v3605_v29  ;;  %v2969_v30 = vld [vmem:[%s4521_s8] ss:$0 sm:$0xff] }
  0x4a   :  { %3163 = vmatprep.subr.mxu0 %v157_v31 }
  0x4b   :  { %3164 = vmatpush3.msra.mxu0 %v141_v32 }
  0x4c   :  { %3165 = vmatprep.subr.mxu0 %v156_v33 }
  0x4d   :  { %3166 = vmatpush3.msra.mxu0 %v140_v34 }
  0x4e   :  { %3167 = vmatprep.subr.mxu0 %v155_v35 }
  0x4f   :  { %3168 = vmatpush3.msra.mxu0 %v139_v36 }
  0x50   :  { %383 = vmatmul.mubr.f32.vlgmr.msra.gmra.mxu0 %v73_v37 }
  0xee   :  { %v3099_v38 = vpop.f32.mrf.mxu0 }
  0xf0   :  { %v3100_v39 = vpop.f32.mrf.mxu0 }
  0xf1   :  { %v3101_v41 = vadd.f32 %v3100_v39, %v3099_v38 }
  0xf2   :  { %v3134_v40 = vpop.f32.mrf.mxu1 }
  0xf3   :  { %v245_v44 = vadd.f32 %v3101_v41, %v2966_v42 }
  0xf4   :  { %v3135_v43 = vpop.f32.mrf.mxu1 }
  0xf5   :  { %v3136_v45 = vadd.f32 %v3135_v43, %v3134_v40 }
  0xf7   :  { %v315_v48 = vadd.f32 %v3136_v45, %v245_v44 }
 0x110   :  { %v3169_v46 = vpop.f32.mrf.mxu0 }
 0x112   :  { %v3170_v47 = vpop.f32.mrf.mxu0 }
 0x113   :  { %v3171_v49 = vadd.f32 %v3170_v47, %v3169_v46 }
 0x115   :  { %v385_v50 = vadd.f32 %v3171_v49, %v315_v48 }
 0x117   :  { %v391_v52 = vrot.slane %v385_v50, 7  ;;  %v396_v53 = vrot.slane %v385_v50, 3 }
 0x119   :  { %v398_v55 = vsel %vm393_vm0, %v388_v51, %v396_v53  ;;  %v394_v56 = vsel %vm393_vm0, %v388_v51, %v391_v52 }
 0x11a   :  { %v399_v57 = vadd.f32 %v398_v55, %v389_v54  ;;  %v395_v58 = vadd.f32 %v394_v56, %v389_v54 }
 0x11c   :  { %v4041_v59 = vrot.slane %v399_v57, 3 }
 0x11e   :  { %v4045_v60 = vsel %vm403_vm1, %v395_v58, %v4041_v59  ;;  %v412_v62 = vsel %vm411_vm3, %v4041_v59, 0.0 }
 0x11f   :  { %v408_v61 = vsel %vm407_vm2, %v4045_v60, 0.0 }
 0x120   :  { %409 = vadd.xlane.f32.xlu0 %v408_v61 }
 0x124   :  { %413 = vadd.xlane.f32.xlu0 %v412_v62 }
 0x1a9   :  { %v410_v63 = vpop.xlane.xlu0 %409 }
 0x1aa   :  { %v416_v0 = vmul.f32 0.03125, %v410_v63 }
 0x1ac   :  { %v418_v1 = vsub.f32 %v4045_v60, %v416_v0 }
 0x1ad   :  { %v414_v2 = vpop.xlane.xlu0 %413 }
 0x1ae   :  { %v417_v3 = vmul.f32 0.03125, %v414_v2  ;;  %v420_v4 = vmul.f32 %v418_v1, %v418_v1 }
 0x1b0   :  { %v419_v5 = vsub.f32 %v4041_v59, %v417_v3  ;;  %v422_v6 = vsel %vm407_vm2, %v420_v4, 0.0 }
 0x1b1   :  { %423 = vadd.xlane.f32.xlu1 %v422_v6 }
 0x1b2   :  { %v421_v7 = vmul.f32 %v419_v5, %v419_v5 }
 0x1b4   :  { %v425_v8 = vsel %vm411_vm3, %v421_v7, 0.0 }
 0x1b5   :  { %426 = vadd.xlane.f32.xlu1 %v425_v8 }
 0x23a   :  { %v424_v13 = vpop.xlane.xlu1 %423 }
 0x23b   :  { %v428_v14 = vmul.f32 0.03125, %v424_v13 }
 0x23d   :  { %v430_v15 = vadd.f32 1e-06, %v428_v14 }
 0x23e   :  { %v427_v16 = vpop.xlane.xlu1 %426 }
 0x23f   :  { %3517 = vrsqrt.f32 %v430_v15  ;;  %v429_v17 = vmul.f32 0.03125, %v427_v16 }
 0x241   :  { %v431_v18 = vadd.f32 1e-06, %v429_v17 }
 0x243   :  { %3519 = vrsqrt.f32 %v431_v18 }
 0x24c   :  { %v3518_v19 = vpop.eup %3517 }
 0x24d   :  { %v434_v21 = vmul.f32 %v3518_v19, %v418_v1 }
 0x24f   :  { %v442_v23 = vmul.f32 %v2967_v20, %v434_v21 }
 0x250   :  { %v3520_v24 = vpop.eup %3519 }
 0x251   :  { %v435_v25 = vmul.f32 %v3520_v24, %v419_v5  ;;  %v450_v26 = vadd.f32 %v2968_v22, %v442_v23 }
 0x253   :  { %v443_v27 = vmul.f32 %v2967_v20, %v435_v25  ;;  %3289 = vmatprep.mubr.msk.f32.mxu1 %vm407_vm2, %v450_v26 }
 0x255   :  { %v451_v28 = vadd.f32 %v2968_v22, %v443_v27 }
 0x257   :  { %3290 = vmatmul.mubr.msk.f32.vlgmr.msra.gmra.mxu1 %vm407_vm2, %v451_v28 }
 0x258   :  { %3294 = vmatprep.mubr.msk.f32.mxu1 %vm3606_vm4, %v3605_v29 }
 0x317   :  { %v3291_v31 = vpop.f32.mrf.mxu1 }
 0x318   :  { %v4081_v32 = vadd.f32 %v3291_v31, %v2969_v30 }
 0x319   :  { %v535_v33 = vpop.f32.mrf.mxu1 }
 0x31a   :  { %v4083_v34 = vadd.f32 %v2969_v30, %v535_v33  ;;  %v888_v2 = vrot.slane %v4081_v32, 5 }
 0x31c   :  { %545 = vrot.lane.b32.xlu0 %v4083_v34, %s3607_s30  ;;  %v887_v1 = vrot.slane %v4083_v34, 5 }
 0x31e   :  { %v889_v3 = vsel %vm886_vm8, %v887_v1, %v888_v2 }
 0x320   :  { %715 = vrot.lane.b32.xlu0 %v4083_v34, %s3608_s5 }
 0x38e   :  { %v546_v35 = vpop.permute.xlu0 %545 }
 0x38f   :  { %3293 = vmatpush3.xpose.msk.msra.mxu1 %vm547_vm5, %v546_v35 }
 0x390   :  { %3297 = vmatprep.subr.mxu1 %v3605_v29 }
 0x392   :  { %3295 = vmatmul.mubr.msk.f32.vlgmr.msra.gmra.mxu1 %vm547_vm5, %v4083_v34  ;;  %v716_v49 = vpop.permute.xlu0 %715 }
 0x393   :  { %3299 = vmatprep.mubr.msk.f32.mxu1 %vm3606_vm4, %v3605_v29 }
 0x452   :  { %v618_v36 = vpop.f32.mrf.mxu1 }
 0x453   :  { %v622_v37 = vmul.f32 0.25, %v618_v36 }
 0x454   :  { %v3296_v38 = vpop.f32.mrf.mxu1 }
 0x455   :  { %v624_v39 = vsel %vm623_vm6, %v622_v37, -inf }
 0x456   :  { %625 = vmax.xlane.f32.xlu1 %v624_v39 }
 0x467   :  { %635 = vrot.lane.b32.xlu1 %v4083_v34, %s3609_s23 }
 0x4df   :  { %v626_v40 = vpop.xlane.xlu1 %625 }
 0x4e0   :  { %v627_v41 = vsub.f32 %v622_v37, %v626_v40 }
 0x4e2   :  { %v628_v42 = vmul.f32 1.442695, %v627_v41  ;;  %v1234_v41 = vld [vmem:[%s4522_s9 + $0x18] sm:$0xff] }
 0x4e3   :  { %v636_v43 = vpop.permute.xlu1 %635 }
 0x4e4   :  { %3521 = vpow2.f32 %v628_v42  ;;  %3298 = vmatpush3.msk.msra.mxu1 %vm403_vm1, %v636_v43  ;;  %v1233_v42 = vld [vmem:[%s4522_s9 + $0x10] sm:$0xff]  ;;  %v1232_v43 = vld [vmem:[%s4522_s9 + $0x8] sm:$0xff] }
 0x4e5   :  { %3302 = vmatprep.subr.mxu1 %v3605_v29 }
 0x4f1   :  { %v3522_v44 = vpop.eup %3521 }
 0x4f2   :  { %v630_v45 = vsel %vm623_vm6, %v3522_v44, 0.0 }
 0x4f3   :  { %631 = vadd.xlane.f32.xlu1 %v630_v45 }
 0x504   :  { %713 = vrot.lane.b32.xlu1 %v4083_v34, %s3610_s1 }
 0x57c   :  { %v632_v46 = vpop.xlane.xlu1 %631 }
 0x57d   :  { %3523 = vrcp.f32 %v632_v46 }
 0x580   :  { %v714_v50 = vpop.permute.xlu1 %713 }
 0x58a   :  { %v3524_v47 = vpop.eup %3523 }
 0x58b   :  { %v634_v48 = vmul.f32 %v3524_v47, %v3522_v44  ;;  %v1231_v44 = vld [vmem:[%s4522_s9] sm:$0xff] }
 0x58d   :  { %3300 = vmatmul.mubr.msk.f32.vlgmr.msra.gmra.mxu1 %vm637_vm7, %v634_v48 }
 0x58e   :  { %3303 = vmatpush3.xpose.msk.msra.mxu1 %vm547_vm5, %v716_v49  ;;  %3304 = vmatprep.mubr.msk.f32.mxu1 %vm3606_vm4, %v3605_v29 }
 0x58f   :  { %3307 = vmatprep.subr.mxu1 %v3605_v29 }
 0x591   :  { %3305 = vmatmul.mubr.msk.f32.vlgmr.msra.gmra.mxu1 %vm547_vm5, %v714_v50 }
 0x592   :  { %3309 = vmatprep.mubr.msk.f32.mxu1 %vm3606_vm4, %v3605_v29 }
 0x64d   :  { %v4111_v51 = vpop.f32.mrf.mxu1 }
 0x64f   :  { %v3301_v52 = vpop.f32.mrf.mxu1 }
 0x651   :  { %v787_v53 = vpop.f32.mrf.mxu1 }
 0x652   :  { %v791_v54 = vmul.f32 0.25, %v787_v53 }
 0x653   :  { %v3306_v55 = vpop.f32.mrf.mxu1 }
 0x654   :  { %v792_v56 = vsel %vm623_vm6, %v791_v54, -inf  ;;  %v2990_v55 = vld [vmem:[%s4523_s10] ss:$0 sm:$0xff] }
 0x655   :  { %793 = vmax.xlane.f32.xlu0 %v792_v56 }
 0x66b   :  { %803 = vrot.lane.b32.xlu0 %v4083_v34, %s3611_s24 }
 0x6de   :  { %v794_v57 = vpop.xlane.xlu0 %793 }
 0x6df   :  { %v795_v58 = vsub.f32 %v791_v54, %v794_v57 }
 0x6e1   :  { %v796_v61 = vmul.f32 1.442695, %v795_v58 }
 0x6e2   :  { %v804_v62 = vpop.permute.xlu0 %803 }
 0x6e3   :  { %3525 = vpow2.f32 %v796_v61  ;;  %3308 = vmatpush3.msk.msra.mxu1 %vm403_vm1, %v804_v62 }
 0x6e4   :  { %3312 = vmatprep.subr.mxu1 %v3605_v29 }
 0x6f0   :  { %v3526_v63 = vpop.eup %3525 }
 0x6f1   :  { %v798_v0 = vsel %vm623_vm6, %v3526_v63, 0.0 }
 0x6f2   :  { %799 = vadd.xlane.f32.xlu1 %v798_v0 }
 0x703   :  { %890 = vrot.lane.b32.xlu1 %v889_v3, %s3607_s30 }
 0x77b   :  { %v800_v4 = vpop.xlane.xlu1 %799 }
 0x77c   :  { %3527 = vrcp.f32 %v800_v4 }
 0x77f   :  { %v891_v7 = vpop.permute.xlu1 %890 }
 0x789   :  { %v3528_v5 = vpop.eup %3527 }
 0x78a   :  { %v802_v6 = vmul.f32 %v3528_v5, %v3526_v63 }
 0x78c   :  { %3310 = vmatmul.mubr.msk.f32.vlgmr.msra.gmra.mxu1 %vm637_vm7, %v802_v6 }
 0x78d   :  { %3313 = vmatpush3.xpose.msk.msra.mxu1 %vm547_vm5, %v891_v7  ;;  %3314 = vmatprep.mubr.msk.f32.mxu1 %vm3606_vm4, %v3605_v29 }
 0x78e   :  { %3317 = vmatprep.subr.mxu1 %v3605_v29 }
 0x790   :  { %3315 = vmatmul.mubr.msk.f32.vlgmr.msra.gmra.mxu1 %vm547_vm5, %v889_v3 }
 0x791   :  { %3319 = vmatprep.mubr.msk.f32.mxu1 %vm3606_vm4, %v3605_v29 }
 0x84c   :  { %v4131_v8 = vpop.f32.mrf.mxu1 }
 0x84e   :  { %v3311_v9 = vpop.f32.mrf.mxu1 }
 0x84f   :  { %v1372_v9 = vld [vmem:[%s4526_s13 + $0x10] sm:$0xff] }
 0x850   :  { %v962_v10 = vpop.f32.mrf.mxu1 }
 0x851   :  { %v966_v11 = vmul.f32 0.25, %v962_v10  ;;  %v1371_v10 = vld [vmem:[%s4526_s13 + $0x8] sm:$0xff] }
 0x852   :  { %v3316_v12 = vpop.f32.mrf.mxu1 }
 0x853   :  { %v967_v13 = vsel %vm623_vm6, %v966_v11, -inf }
 0x854   :  { %968 = vmax.xlane.f32.xlu0 %v967_v13 }
 0x86a   :  { %978 = vrot.lane.b32.xlu0 %v889_v3, %s3609_s23 }
 0x86e   :  { %1055 = vrot.lane.b32.xlu0 %v889_v3, %s3610_s1 }
 0x8dd   :  { %v969_v14 = vpop.xlane.xlu0 %968 }
 0x8de   :  { %v970_v15 = vsub.f32 %v966_v11, %v969_v14  ;;  %v1370_v11 = vld [vmem:[%s4526_s13] sm:$0xff] }
 0x8e0   :  { %v971_v16 = vmul.f32 1.442695, %v970_v15 }
 0x8e1   :  { %v979_v17 = vpop.permute.xlu0 %978 }
 0x8e2   :  { %3529 = vpow2.f32 %v971_v16  ;;  %3318 = vmatpush3.msk.msra.mxu1 %vm403_vm1, %v979_v17 }
 0x8e3   :  { %3322 = vmatprep.subr.mxu1 %v3605_v29 }
 0x8e5   :  { %v1056_v24 = vpop.permute.xlu0 %1055 }
 0x8ef   :  { %v3530_v18 = vpop.eup %3529 }
 0x8f0   :  { %v973_v19 = vsel %vm623_vm6, %v3530_v18, 0.0 }
 0x8f1   :  { %974 = vadd.xlane.f32.xlu1 %v973_v19  ;;  %v2991_v19 = vld [vmem:[%s4524_s11] ss:$0 sm:$0xff] }
 0x902   :  { %1057 = vrot.lane.b32.xlu1 %v889_v3, %s3608_s5 }
 0x97a   :  { %v975_v20 = vpop.xlane.xlu1 %974 }
 0x97b   :  { %3531 = vrcp.f32 %v975_v20 }
 0x97e   :  { %v1058_v23 = vpop.permute.xlu1 %1057 }
 0x988   :  { %v3532_v21 = vpop.eup %3531 }
 0x989   :  { %v977_v22 = vmul.f32 %v3532_v21, %v3530_v18  ;;  %v2992_v21 = vld [vmem:[%s4525_s12] ss:$0 sm:$0xff] }
 0x98b   :  { %3320 = vmatmul.mubr.msk.f32.vlgmr.msra.gmra.mxu1 %vm637_vm7, %v977_v22 }
 0x98c   :  { %3323 = vmatpush3.xpose.msk.msra.mxu1 %vm547_vm5, %v1058_v23  ;;  %3324 = vmatprep.mubr.msk.f32.mxu1 %vm3606_vm4, %v3605_v29 }
 0x98d   :  { %3327 = vmatprep.subr.mxu1 %v3605_v29 }
 0x98f   :  { %3325 = vmatmul.mubr.msk.f32.vlgmr.msra.gmra.mxu1 %vm547_vm5, %v1056_v24 }
 0x990   :  { %3329 = vmatprep.mubr.msk.f32.mxu1 %vm3606_vm4, %v3605_v29 }
 0xa4b   :  { %v1051_v25 = vpop.f32.mrf.mxu1 }
 0xa4d   :  { %v3321_v26 = vpop.f32.mrf.mxu1 }
 0xa4f   :  { %v1129_v27 = vpop.f32.mrf.mxu1 }
 0xa50   :  { %v1133_v28 = vmul.f32 0.25, %v1129_v27 }
 0xa51   :  { %v3326_v30 = vpop.f32.mrf.mxu1 }
 0xa52   :  { %v1134_v31 = vsel %vm623_vm6, %v1133_v28, -inf  ;;  %v1530_v30 = vld [vmem:[%s4528_s15 + $0x70] sm:$0xff] }
 0xa53   :  { %1135 = vmax.xlane.f32.xlu1 %v1134_v31  ;;  %v1529_v31 = vld [vmem:[%s4528_s15 + $0x68] sm:$0xff] }
 0xadc   :  { %v1136_v32 = vpop.xlane.xlu1 %1135 }
 0xadd   :  { %v1137_v33 = vsub.f32 %v1133_v28, %v1136_v32  ;;  %v1531_v28 = vld [vmem:[%s4528_s15 + $0x78] sm:$0xff]  ;;  %v1528_v32 = vld [vmem:[%s4528_s15 + $0x60] sm:$0xff] }
 0xade   :  { %3354 = vmatprep.subr.mxu0 %v1531_v28 }
 0xadf   :  { %v1138_v34 = vmul.f32 1.442695, %v1137_v33  ;;  %3355 = vmatpush3.msra.mxu0 %v1531_v28  ;;  %v1527_v33 = vld [vmem:[%s4528_s15 + $0x58] sm:$0xff] }
 0xae0   :  { %3356 = vmatprep.subr.mxu0 %v1530_v30 }
 0xae1   :  { %3533 = vpow2.f32 %v1138_v34  ;;  %3357 = vmatpush3.msra.mxu0 %v1530_v30  ;;  %v1526_v34 = vld [vmem:[%s4528_s15 + $0x50] sm:$0xff] }
 0xae2   :  { %3358 = vmatprep.subr.mxu0 %v1529_v31 }
 0xae3   :  { %3359 = vmatpush3.msra.mxu0 %v1529_v31 }
 0xae4   :  { %3360 = vmatprep.subr.mxu0 %v1528_v32 }
 0xae5   :  { %3361 = vmatpush3.msra.mxu0 %v1528_v32 }
 0xae6   :  { %3362 = vmatprep.subr.mxu0 %v1527_v33 }
 0xae7   :  { %3363 = vmatpush3.msra.mxu0 %v1527_v33 }
 0xae8   :  { %3364 = vmatprep.subr.mxu0 %v1526_v34 }
 0xae9   :  { %3365 = vmatpush3.msra.mxu0 %v1526_v34 }
 0xaee   :  { %v3534_v35 = vpop.eup %3533 }
 0xaef   :  { %v1140_v36 = vsel %vm623_vm6, %v3534_v35, 0.0 }
 0xaf0   :  { %1141 = vadd.xlane.f32.xlu0 %v1140_v36  ;;  %v1524_v36 = vld [vmem:[%s4528_s15 + $0x40] sm:$0xff] }
 0xb06   :  { %1145 = vrot.lane.b32.xlu0 %v889_v3, %s3611_s24 }
 0xb79   :  { %v1142_v37 = vpop.xlane.xlu0 %1141 }
 0xb7a   :  { %3535 = vrcp.f32 %v1142_v37  ;;  %v1523_v37 = vld [vmem:[%s4528_s15 + $0x38] sm:$0xff] }
 0xb7d   :  { %v1146_v38 = vpop.permute.xlu0 %1145 }
 0xb7e   :  { %3328 = vmatpush3.msk.msra.mxu1 %vm403_vm1, %v1146_v38  ;;  %v1522_v38 = vld [vmem:[%s4528_s15 + $0x30] sm:$0xff] }
 0xb7f   :  { %3332 = vmatprep.subr.mxu1 %v1234_v41 }
 0xb87   :  { %v3536_v39 = vpop.eup %3535 }
 0xb88   :  { %v1144_v40 = vmul.f32 %v3536_v39, %v3534_v35  ;;  %v1525_v35 = vld [vmem:[%s4528_s15 + $0x48] sm:$0xff] }
 0xb89   :  { %3366 = vmatprep.subr.mxu0 %v1525_v35  ;;  %v1521_v39 = vld [vmem:[%s4528_s15 + $0x28] sm:$0xff] }
 0xb8a   :  { %3330 = vmatmul.mubr.msk.f32.vlgmr.msra.gmra.mxu1 %vm637_vm7, %v1144_v40  ;;  %3367 = vmatpush3.msra.mxu0 %v1525_v35  ;;  %v1520_v40 = vld [vmem:[%s4528_s15 + $0x20] sm:$0xff] }
 0xb8b   :  { %3333 = vmatpush3.msra.mxu1 %v1234_v41  ;;  %3368 = vmatprep.subr.mxu0 %v1524_v36  ;;  %v1519_v41 = vld [vmem:[%s4528_s15 + $0x18] sm:$0xff] }
 0xb8c   :  { %3334 = vmatprep.subr.mxu1 %v1233_v42  ;;  %3369 = vmatpush3.msra.mxu0 %v1524_v36 }
 0xb8d   :  { %3335 = vmatpush3.msra.mxu1 %v1233_v42  ;;  %3370 = vmatprep.subr.mxu0 %v1523_v37  ;;  %v1518_v42 = vld [vmem:[%s4528_s15 + $0x10] sm:$0xff] }
 0xb8e   :  { %3336 = vmatprep.subr.mxu1 %v1232_v43  ;;  %3371 = vmatpush3.msra.mxu0 %v1523_v37 }
 0xb8f   :  { %3337 = vmatpush3.msra.mxu1 %v1232_v43  ;;  %3372 = vmatprep.subr.mxu0 %v1522_v38  ;;  %v1517_v43 = vld [vmem:[%s4528_s15 + $0x8] sm:$0xff] }
 0xb90   :  { %3338 = vmatprep.subr.mxu1 %v1231_v44  ;;  %3373 = vmatpush3.msra.mxu0 %v1522_v38 }
 0xb91   :  { %3339 = vmatpush3.msra.mxu1 %v1231_v44  ;;  %3374 = vmatprep.subr.mxu0 %v1521_v39  ;;  %v1516_v44 = vld [vmem:[%s4528_s15] sm:$0xff] }
 0xb92   :  { %3375 = vmatpush3.msra.mxu0 %v1521_v39 }
 0xb93   :  { %3376 = vmatprep.subr.mxu0 %v1520_v40 }
 0xb94   :  { %3377 = vmatpush3.msra.mxu0 %v1520_v40  ;;  %v2996_v40 = vld [vmem:[%s4529_s16] ss:$0 sm:$0xff] }
 0xb95   :  { %3378 = vmatprep.subr.mxu0 %v1519_v41 }
 0xb96   :  { %3379 = vmatpush3.msra.mxu0 %v1519_v41 }
 0xb97   :  { %3380 = vmatprep.subr.mxu0 %v1518_v42 }
 0xb98   :  { %3381 = vmatpush3.msra.mxu0 %v1518_v42 }
 0xb99   :  { %3382 = vmatprep.subr.mxu0 %v1517_v43 }
 0xb9a   :  { %3383 = vmatpush3.msra.mxu0 %v1517_v43 }
 0xb9b   :  { %3384 = vmatprep.subr.mxu0 %v1516_v44 }
 0xb9c   :  { %3385 = vmatpush3.msra.mxu0 %v1516_v44 }
 0xb9d   :  { %3430 = vmatprep.subr.mxu0 %v3605_v29 }
 0xc4a   :  { %v1218_v45 = vpop.f32.mrf.mxu1 }
 0xc4b   :  { %1223 = vrot.lane.b32.xlu1 %v1218_v45, %s3612_s4  ;;  %v2993_v45 = vld [vmem:[%s4527_s14] ss:$0 sm:$0xff] }
 0xc4c   :  { %v3331_v46 = vpop.f32.mrf.mxu1 }
 0xc4f   :  { %881 = vrot.lane.b32.xlu1 %v4131_v8, %s3612_s4  ;;  %v1373_v8 = vld [vmem:[%s4526_s13 + $0x18] sm:$0xff] }
 0xc50   :  { %3343 = vmatprep.subr.mxu1 %v1373_v8 }
 0xcbd   :  { %v1224_v47 = vpop.permute.xlu1 %1223 }
 0xcbe   :  { %v1226_v48 = vsel %vm547_vm5, %v1051_v25, %v1224_v47 }
 0xcbf   :  { %v1228_v49 = vrot.slane %v1226_v48, 3 }
 0xcc1   :  { %v882_v50 = vpop.permute.xlu1 %881 }
 0xcc2   :  { %v884_v52 = vsel %vm547_vm5, %v4111_v51, %v882_v50 }
 0xcc3   :  { %v1230_v53 = vsel %vm403_vm1, %v884_v52, %v1228_v49 }
 0xcc4   :  { %3340 = vmatprep.mubr.msk.f32.mxu1 %vm407_vm2, %v1230_v53 }
 0xcc5   :  { %3341 = vmatmul.mubr.msk.f32.vlgmr.msra.gmra.mxu1 %vm407_vm2, %v1228_v49 }
 0xcc6   :  { %3344 = vmatpush3.msra.mxu1 %v1373_v8 }
 0xcc7   :  { %3345 = vmatprep.subr.mxu1 %v1372_v9 }
 0xcc8   :  { %3346 = vmatpush3.msra.mxu1 %v1372_v9 }
 0xcc9   :  { %3347 = vmatprep.subr.mxu1 %v1371_v10 }
 0xcca   :  { %3348 = vmatpush3.msra.mxu1 %v1371_v10 }
 0xccb   :  { %3349 = vmatprep.subr.mxu1 %v1370_v11 }
 0xccc   :  { %3350 = vmatpush3.msra.mxu1 %v1370_v11 }
 0xd85   :  { %v3342_v54 = vpop.f32.mrf.mxu1 }
 0xd86   :  { %v1316_v56 = vadd.f32 %v3342_v54, %v4041_v59 }
 0xd87   :  { %v1306_v57 = vpop.f32.mrf.mxu1 }
 0xd88   :  { %v4178_v58 = vadd.f32 %v2990_v55, %v1316_v56  ;;  %v1315_v61 = vadd.f32 %v1306_v57, %v4045_v60 }
 0xd8a   :  { %v4181_v62 = vadd.f32 %v2990_v55, %v1315_v61  ;;  %v1331_v51 = vsel %vm411_vm3, %v4178_v58, 0.0 }
 0xd8b   :  { %1332 = vadd.xlane.f32.xlu1 %v1331_v51 }
 0xd8c   :  { %v1328_v63 = vsel %vm407_vm2, %v4181_v62, 0.0 }
 0xd8d   :  { %1329 = vadd.xlane.f32.xlu0 %v1328_v63 }
 0xe14   :  { %v1333_v0 = vpop.xlane.xlu1 %1332 }
 0xe15   :  { %v1335_v1 = vmul.f32 0.03125, %v1333_v0 }
 0xe16   :  { %v1330_v2 = vpop.xlane.xlu0 %1329 }
 0xe17   :  { %v1334_v3 = vmul.f32 0.03125, %v1330_v2  ;;  %v1337_v59 = vsub.f32 %v4178_v58, %v1335_v1 }
 0xe19   :  { %v1336_v4 = vsub.f32 %v4181_v62, %v1334_v3  ;;  %v1339_v6 = vmul.f32 %v1337_v59, %v1337_v59 }
 0xe1b   :  { %v1338_v5 = vmul.f32 %v1336_v4, %v1336_v4  ;;  %v1343_v7 = vsel %vm411_vm3, %v1339_v6, 0.0 }
 0xe1d   :  { %v1340_v60 = vsel %vm407_vm2, %v1338_v5, 0.0 }
 0xe1e   :  { %1341 = vadd.xlane.f32.xlu0 %v1340_v60 }
 0xe22   :  { %1344 = vadd.xlane.f32.xlu0 %v1343_v7 }
 0xea7   :  { %v1342_v12 = vpop.xlane.xlu0 %1341 }
 0xea8   :  { %v1346_v13 = vmul.f32 0.03125, %v1342_v12 }
 0xeaa   :  { %v1348_v14 = vadd.f32 1e-06, %v1346_v13 }
 0xeab   :  { %v1345_v15 = vpop.xlane.xlu0 %1344 }
 0xeac   :  { %3537 = vrsqrt.f32 %v1348_v14  ;;  %v1347_v16 = vmul.f32 0.03125, %v1345_v15 }
 0xeae   :  { %v1349_v17 = vadd.f32 1e-06, %v1347_v16 }
 0xeb0   :  { %3539 = vrsqrt.f32 %v1349_v17 }
 0xeb9   :  { %v3538_v18 = vpop.eup %3537 }
 0xeba   :  { %v1352_v20 = vmul.f32 %v3538_v18, %v1336_v4 }
 0xebc   :  { %v1360_v22 = vmul.f32 %v2991_v19, %v1352_v20 }
 0xebd   :  { %v3540_v23 = vpop.eup %3539 }
 0xebe   :  { %v1353_v24 = vmul.f32 %v3540_v23, %v1337_v59  ;;  %v1368_v25 = vadd.f32 %v2992_v21, %v1360_v22 }
 0xec0   :  { %v1361_v26 = vmul.f32 %v2991_v19, %v1353_v24  ;;  %3351 = vmatprep.mubr.msk.f32.mxu1 %vm407_vm2, %v1368_v25 }
 0xec2   :  { %v1369_v27 = vadd.f32 %v2992_v21, %v1361_v26 }
 0xec4   :  { %3352 = vmatmul.mubr.msk.f32.vlgmr.msra.gmra.mxu1 %vm407_vm2, %v1369_v27 }
 0xf84   :  { %v3353_v46 = vpop.f32.mrf.mxu1 }
 0xf85   :  { %v1459_v47 = vadd.f32 %v3353_v46, %v2993_v45 }
 0xf86   :  { %v1453_v48 = vpop.f32.mrf.mxu1 }
 0xf87   :  { %v1465_v49 = vmul.f32 0.70710677, %v1459_v47  ;;  %v1454_v50 = vadd.f32 %v2993_v45, %v1453_v48  ;;  %v1463_v36 = vmul.f32 0.5, %v1459_v47 }
 0xf89   :  { %v1467_v52 = vand.u32 2147483647, %v1465_v49  ;;  %v1464_v53 = vmul.f32 0.70710677, %v1454_v50  ;;  %vm1507_vm9 = vcmp.lt.f32.partialorder %v1465_v49, 0.0  ;;  %v1462_v34 = vmul.f32 0.5, %v1454_v50 }
 0xf8b   :  { %v1469_v54 = vmul.f32 0.3275911, %v1467_v52  ;;  %v1466_v55 = vand.u32 2147483647, %v1464_v53  ;;  %v1495_v51 = vsub.f32 0.0, %v1467_v52  ;;  %vm1506_vm10 = vcmp.lt.f32.partialorder %v1464_v53, 0.0 }
 0xf8d   :  { %v1471_v56 = vadd.f32 1.0, %v1469_v54  ;;  %v1468_v57 = vmul.f32 0.3275911, %v1466_v55  ;;  %v1494_v63 = vsub.f32 0.0, %v1466_v55  ;;  %v1497_v0 = vmul.f32 %v1495_v51, %v1467_v52  ;;  %v3002_v51 = vld [vmem:[%s4520_s7 + $0x28] sm:$0xff] }
 0xf8f   :  { %3541 = vrcp.f32 %v1471_v56  ;;  %v1470_v61 = vadd.f32 1.0, %v1468_v57  ;;  %v1496_v2 = vmul.f32 %v1494_v63, %v1466_v55  ;;  %v1500_v59 = vmul.f32 1.442695, %v1497_v0  ;;  %v3004_v57 = vld [vmem:[%s4520_s7 + $0x38] sm:$0xff]  ;;  %v3001_v63 = vld [vmem:[%s4520_s7 + $0x20] sm:$0xff] }
 0xf90   :  { %3389 = vmatprep.subr.mxu1 %v3004_v57 }
 0xf91   :  { %3543 = vrcp.f32 %v1470_v61  ;;  %v1498_v60 = vmul.f32 1.442695, %v1496_v2  ;;  %v3003_v61 = vld [vmem:[%s4520_s7 + $0x30] sm:$0xff]  ;;  %3390 = vmatpush3.msra.mxu1 %v3004_v57 }
 0xf92   :  { %3545 = vpow2.f32 %v1500_v59  ;;  %3391 = vmatprep.subr.mxu1 %v3003_v61 }
 0xf93   :  { %3547 = vpow2.f32 %v1498_v60  ;;  %3392 = vmatpush3.msra.mxu1 %v3003_v61  ;;  %v2999_v60 = vld [vmem:[%s4549_s22 + $0x1] ss:$0 sm:$0xff] }
 0xf94   :  { %3393 = vmatprep.subr.mxu1 %v3002_v51 }
 0xf95   :  { %3394 = vmatpush3.msra.mxu1 %v3002_v51 }
 0xf96   :  { %3395 = vmatprep.subr.mxu1 %v3001_v63 }
 0xf97   :  { %3396 = vmatpush3.msra.mxu1 %v3001_v63 }
 0xf98   :  { %3400 = vmatprep.subr.mxu1 %v3605_v29 }
 0xf9c   :  { %v3542_v1 = vpop.eup %3541 }
 0xf9d   :  { %v1477_v3 = vmul.f32 1.0614054, %v3542_v1 }
 0xf9e   :  { %v3544_v4 = vpop.eup %3543 }
 0xf9f   :  { %v1479_v5 = vadd.f32 -1.4531521, %v1477_v3  ;;  %v1476_v6 = vmul.f32 1.0614054, %v3544_v4  ;;  %v3546_v20 = vpop.eup %3545 }
 0xfa0   :  { %v3548_v24 = vpop.eup %3547 }
 0xfa1   :  { %v1481_v7 = vmul.f32 %v3542_v1, %v1479_v5  ;;  %v1478_v8 = vadd.f32 -1.4531521, %v1476_v6 }
 0xfa3   :  { %v1483_v9 = vadd.f32 1.4214138, %v1481_v7  ;;  %v1480_v10 = vmul.f32 %v3544_v4, %v1478_v8 }
 0xfa5   :  { %v1485_v11 = vmul.f32 %v3542_v1, %v1483_v9  ;;  %v1482_v12 = vadd.f32 1.4214138, %v1480_v10  ;;  %v3000_v10 = vld [vmem:[%s4519_s6 + $0x1] ss:$0 sm:$0xff] }
 0xfa7   :  { %v1487_v13 = vadd.f32 -0.28449672, %v1485_v11  ;;  %v1484_v14 = vmul.f32 %v3544_v4, %v1482_v12 }
 0xfa9   :  { %v1489_v15 = vmul.f32 %v3542_v1, %v1487_v13  ;;  %v1486_v16 = vadd.f32 -0.28449672, %v1484_v14  ;;  %v3006_v14 = vld [vmem:[%s4521_s8 + $0x1] ss:$0 sm:$0xff]  ;;  %s3613_s8 = smov [#allocation2]  }
 0xfab   :  { %v1491_v17 = vadd.f32 0.2548296, %v1489_v15  ;;  %v1488_v18 = vmul.f32 %v3544_v4, %v1486_v16 }
 0xfad   :  { %v1493_v19 = vmul.f32 %v3542_v1, %v1491_v17  ;;  %v1490_v21 = vadd.f32 0.2548296, %v1488_v18 }
 0xfaf   :  { %v1503_v22 = vmul.f32 %v3546_v20, %v1493_v19  ;;  %v1492_v23 = vmul.f32 %v3544_v4, %v1490_v21 }
 0xfb1   :  { %v1505_v25 = vsub.f32 1.0, %v1503_v22  ;;  %v1502_v26 = vmul.f32 %v3548_v24, %v1492_v23 }
 0xfb3   :  { %v1509_v27 = vsub.f32 0.0, %v1505_v25  ;;  %v1504_v28 = vsub.f32 1.0, %v1502_v26 }
 0xfb5   :  { %v1511_v30 = vsel %vm1507_vm9, %v1509_v27, %v1505_v25  ;;  %v1508_v31 = vsub.f32 0.0, %v1504_v28 }
 0xfb6   :  { %v1513_v32 = vadd.f32 1.0, %v1511_v30 }
 0xfb7   :  { %v1510_v33 = vsel %vm1506_vm10, %v1508_v31, %v1504_v28 }
 0xfb8   :  { %v1512_v35 = vadd.f32 1.0, %v1510_v33  ;;  %v1515_v38 = vmul.f32 %v1513_v32, %v1463_v36 }
 0xfba   :  { %v1514_v37 = vmul.f32 %v1512_v35, %v1462_v34 }
 0xfbc   :  { %3386 = vmatprep.mubr.f32.mxu0 %v1514_v37 }
 0xfbd   :  { %3387 = vmatmul.mubr.f32.vlgmr.msra.gmra.mxu0 %v1515_v38 }
 0xfbe   :  { %3432 = vmatprep.mubr.msk.f32.mxu0 %vm3606_vm4, %v3605_v29 }
0x107d   :  { %v3388_v39 = vpop.f32.mrf.mxu0 }
0x107e   :  { %v1608_v41 = vadd.f32 %v3388_v39, %v4178_v58 }
0x107f   :  { %v1598_v42 = vpop.f32.mrf.mxu0 }
0x1080   :  { %v4269_v43 = vadd.f32 %v2996_v40, %v1608_v41  ;;  %v1607_v44 = vadd.f32 %v1598_v42, %v4181_v62 }
0x1082   :  { %v4272_v45 = vadd.f32 %v2996_v40, %v1607_v44  ;;  %v1625_v46 = vsel %vm411_vm3, %v4269_v43, 0.0 }
0x1083   :  { %1626 = vadd.xlane.f32.xlu1 %v1625_v46 }
0x1084   :  { %v1622_v47 = vsel %vm407_vm2, %v4272_v45, 0.0 }
0x1085   :  { %1623 = vadd.xlane.f32.xlu0 %v1622_v47 }
0x110c   :  { %v1627_v48 = vpop.xlane.xlu1 %1626 }
0x110d   :  { %v1629_v49 = vmul.f32 0.03125, %v1627_v48 }
0x110e   :  { %v1624_v50 = vpop.xlane.xlu0 %1623 }
0x110f   :  { %v1631_v58 = vsub.f32 %v4269_v43, %v1629_v49  ;;  %v1628_v52 = vmul.f32 0.03125, %v1624_v50 }
0x1111   :  { %v1630_v53 = vsub.f32 %v4272_v45, %v1628_v52  ;;  %v1633_v54 = vmul.f32 %v1631_v58, %v1631_v58 }
0x1113   :  { %v1637_v62 = vsel %vm411_vm3, %v1633_v54, 0.0  ;;  %v1632_v55 = vmul.f32 %v1630_v53, %v1630_v53 }
0x1114   :  { %1638 = vadd.xlane.f32.xlu1 %v1637_v62 }
0x1115   :  { %v1634_v56 = vsel %vm407_vm2, %v1632_v55, 0.0 }
0x1116   :  { %1635 = vadd.xlane.f32.xlu0 %v1634_v56 }
0x119d   :  { %v1639_v0 = vpop.xlane.xlu1 %1638 }
0x119e   :  { %v1641_v1 = vmul.f32 0.03125, %v1639_v0 }
0x119f   :  { %v1636_v2 = vpop.xlane.xlu0 %1635 }
0x11a0   :  { %v1643_v3 = vadd.f32 1e-06, %v1641_v1  ;;  %v1640_v59 = vmul.f32 0.03125, %v1636_v2 }
0x11a2   :  { %3549 = vrsqrt.f32 %v1643_v3  ;;  %v1642_v4 = vadd.f32 1e-06, %v1640_v59 }
0x11a4   :  { %3551 = vrsqrt.f32 %v1642_v4 }
0x11af   :  { %v3550_v5 = vpop.eup %3549 }
0x11b0   :  { %v1647_v6 = vmul.f32 %v3550_v5, %v1631_v58 }
0x11b1   :  { %v3552_v7 = vpop.eup %3551 }
0x11b2   :  { %v1646_v8 = vmul.f32 %v3552_v7, %v1630_v53  ;;  %v1655_v9 = vmul.f32 %v2999_v60, %v1647_v6 }
0x11b4   :  { %v1654_v11 = vmul.f32 %v2999_v60, %v1646_v8  ;;  %v1663_v13 = vadd.f32 %v3000_v10, %v1655_v9 }
0x11b6   :  { %v1662_v12 = vadd.f32 %v3000_v10, %v1654_v11 }
0x11b8   :  { %3397 = vmatprep.mubr.msk.f32.mxu1 %vm407_vm2, %v1662_v12 }
0x11b9   :  { %3398 = vmatmul.mubr.msk.f32.vlgmr.msra.gmra.mxu1 %vm407_vm2, %v1663_v13 }
0x11ba   :  { %3402 = vmatprep.mubr.msk.f32.mxu1 %vm3606_vm4, %v3605_v29 }
0x1279   :  { %v3399_v15 = vpop.f32.mrf.mxu1 }
0x127a   :  { %v1755_v16 = vadd.f32 %v3399_v15, %v3006_v14 }
0x127b   :  { %v1749_v17 = vpop.f32.mrf.mxu1 }
0x127c   :  { %v1750_v18 = vadd.f32 %v3006_v14, %v1749_v17  ;;  %v2098_v32 = vrot.slane %v1755_v16, 5 }
0x127e   :  { %1759 = vrot.lane.b32.xlu0 %v1750_v18, %s3607_s30  ;;  %v2097_v31 = vrot.slane %v1750_v18, 5 }
0x1280   :  { %v4322_v33 = vsel %vm886_vm8, %v2097_v31, %v2098_v32 }
0x1282   :  { %1926 = vrot.lane.b32.xlu0 %v1750_v18, %s3608_s5 }
0x12f0   :  { %v1760_v19 = vpop.permute.xlu0 %1759 }
0x12f1   :  { %3401 = vmatpush3.xpose.msk.msra.mxu1 %vm547_vm5, %v1760_v19 }
0x12f2   :  { %3405 = vmatprep.subr.mxu1 %v3605_v29 }
0x12f4   :  { %3403 = vmatmul.mubr.msk.f32.vlgmr.msra.gmra.mxu1 %vm547_vm5, %v1750_v18  ;;  %v1927_v37 = vpop.permute.xlu0 %1926 }
0x12f5   :  { %3407 = vmatprep.mubr.msk.f32.mxu1 %vm3606_vm4, %v3605_v29 }
0x13b4   :  { %v1831_v20 = vpop.f32.mrf.mxu1 }
0x13b5   :  { %v1835_v21 = vmul.f32 0.25, %v1831_v20 }
0x13b6   :  { %v3404_v22 = vpop.f32.mrf.mxu1 }
0x13b7   :  { %v1836_v23 = vsel %vm623_vm6, %v1835_v21, -inf }
0x13b8   :  { %1837 = vmax.xlane.f32.xlu1 %v1836_v23  ;;  %v3028_v23 = vld [vmem:[%s4522_s9 + $0x38] sm:$0xff] }
0x13c9   :  { %1847 = vrot.lane.b32.xlu1 %v1750_v18, %s3609_s23 }
0x1441   :  { %v1838_v24 = vpop.xlane.xlu1 %1837 }
0x1442   :  { %v1839_v25 = vsub.f32 %v1835_v21, %v1838_v24  ;;  %v3027_v24 = vld [vmem:[%s4522_s9 + $0x30] sm:$0xff] }
0x1444   :  { %v1840_v26 = vmul.f32 1.442695, %v1839_v25  ;;  %v3026_v25 = vld [vmem:[%s4522_s9 + $0x28] sm:$0xff] }
0x1445   :  { %v1848_v27 = vpop.permute.xlu1 %1847 }
0x1446   :  { %3553 = vpow2.f32 %v1840_v26  ;;  %3406 = vmatpush3.msk.msra.mxu1 %vm403_vm1, %v1848_v27  ;;  %v3025_v26 = vld [vmem:[%s4522_s9 + $0x20] sm:$0xff] }
0x1447   :  { %3410 = vmatprep.subr.mxu1 %v3605_v29 }
0x1453   :  { %v3554_v28 = vpop.eup %3553 }
0x1454   :  { %v1842_v30 = vsel %vm623_vm6, %v3554_v28, 0.0 }
0x1455   :  { %1843 = vadd.xlane.f32.xlu1 %v1842_v30 }
0x1466   :  { %1924 = vrot.lane.b32.xlu1 %v1750_v18, %s3610_s1 }
0x146a   :  { %2100 = vrot.lane.b32.xlu1 %v4322_v33, %s3607_s30 }
0x14de   :  { %v1844_v34 = vpop.xlane.xlu1 %1843 }
0x14df   :  { %3555 = vrcp.f32 %v1844_v34 }
0x14e2   :  { %v1925_v38 = vpop.permute.xlu1 %1924 }
0x14e6   :  { %v2101_v54 = vpop.permute.xlu1 %2100 }
0x14ec   :  { %v3556_v35 = vpop.eup %3555 }
0x14ed   :  { %v1846_v36 = vmul.f32 %v3556_v35, %v3554_v28 }
0x14ef   :  { %3408 = vmatmul.mubr.msk.f32.vlgmr.msra.gmra.mxu1 %vm637_vm7, %v1846_v36 }
0x14f0   :  { %3411 = vmatpush3.xpose.msk.msra.mxu1 %vm547_vm5, %v1927_v37  ;;  %3412 = vmatprep.mubr.msk.f32.mxu1 %vm3606_vm4, %v3605_v29 }
0x14f1   :  { %3415 = vmatprep.subr.mxu1 %v3605_v29 }
0x14f3   :  { %3413 = vmatmul.mubr.msk.f32.vlgmr.msra.gmra.mxu1 %vm547_vm5, %v1925_v38 }
0x14f4   :  { %3417 = vmatprep.mubr.msk.f32.mxu1 %vm3606_vm4, %v3605_v29 }
0x15af   :  { %v4334_v39 = vpop.f32.mrf.mxu1 }
0x15b1   :  { %v3409_v40 = vpop.f32.mrf.mxu1 }
0x15b2   :  { %v3032_v40 = vld [vmem:[%s4523_s10 + $0x1] ss:$0 sm:$0xff] }
0x15b3   :  { %v1998_v41 = vpop.f32.mrf.mxu1 }
0x15b4   :  { %v2002_v42 = vmul.f32 0.25, %v1998_v41 }
0x15b5   :  { %v3414_v44 = vpop.f32.mrf.mxu1 }
0x15b6   :  { %v2003_v46 = vsel %vm623_vm6, %v2002_v42, -inf }
0x15b7   :  { %2004 = vmax.xlane.f32.xlu0 %v2003_v46 }
0x15cd   :  { %2014 = vrot.lane.b32.xlu0 %v1750_v18, %s3611_s24 }
0x15d1   :  { %2267 = vrot.lane.b32.xlu0 %v4322_v33, %s3608_s5 }
0x1640   :  { %v2005_v47 = vpop.xlane.xlu0 %2004 }
0x1641   :  { %v2006_v48 = vsub.f32 %v2002_v42, %v2005_v47 }
0x1643   :  { %v2007_v49 = vmul.f32 1.442695, %v2006_v48 }
0x1644   :  { %v2015_v50 = vpop.permute.xlu0 %2014 }
0x1645   :  { %3557 = vpow2.f32 %v2007_v49  ;;  %3416 = vmatpush3.msk.msra.mxu1 %vm403_vm1, %v2015_v50 }
0x1646   :  { %3420 = vmatprep.subr.mxu1 %v3605_v29 }
0x1648   :  { %v2268_v58 = vpop.permute.xlu0 %2267 }
0x1649   :  { %3431 = vmatpush3.xpose.msk.msra.mxu0 %vm547_vm5, %v2268_v58 }
0x164a   :  { %3440 = vmatprep.subr.mxu0 %v3028_v23 }
0x1652   :  { %v3558_v52 = vpop.eup %3557 }
0x1653   :  { %v2009_v53 = vsel %vm623_vm6, %v3558_v52, 0.0 }
0x1654   :  { %2010 = vadd.xlane.f32.xlu1 %v2009_v53 }
0x1665   :  { %2265 = vrot.lane.b32.xlu1 %v4322_v33, %s3610_s1 }
0x16dd   :  { %v2011_v62 = vpop.xlane.xlu1 %2010 }
0x16de   :  { %3559 = vrcp.f32 %v2011_v62 }
0x16e1   :  { %v2266_v55 = vpop.permute.xlu1 %2265 }
0x16e2   :  { %3433 = vmatmul.mubr.msk.f32.vlgmr.msra.gmra.mxu0 %vm547_vm5, %v2266_v55 }
0x16e3   :  { %3441 = vmatpush3.msra.mxu0 %v3028_v23  ;;  %v3050_v23 = vld [vmem:[%s4528_s15 + $0xa8] sm:$0xff] }
0x16e4   :  { %3442 = vmatprep.subr.mxu0 %v3027_v24 }
0x16e5   :  { %3443 = vmatpush3.msra.mxu0 %v3027_v24  ;;  %v3049_v24 = vld [vmem:[%s4528_s15 + $0xa0] sm:$0xff] }
0x16e6   :  { %3444 = vmatprep.subr.mxu0 %v3026_v25 }
0x16e7   :  { %3445 = vmatpush3.msra.mxu0 %v3026_v25  ;;  %v3048_v25 = vld [vmem:[%s4528_s15 + $0x98] sm:$0xff] }
0x16e8   :  { %3446 = vmatprep.subr.mxu0 %v3025_v26 }
0x16e9   :  { %3447 = vmatpush3.msra.mxu0 %v3025_v26  ;;  %v3047_v26 = vld [vmem:[%s4528_s15 + $0x90] sm:$0xff] }
0x16eb   :  { %v3560_v56 = vpop.eup %3559 }
0x16ec   :  { %v2013_v57 = vmul.f32 %v3560_v56, %v3558_v52  ;;  %v3040_v56 = vld [vmem:[%s4526_s13 + $0x38] sm:$0xff] }
0x16ee   :  { %3418 = vmatmul.mubr.msk.f32.vlgmr.msra.gmra.mxu1 %vm637_vm7, %v2013_v57  ;;  %v3039_v57 = vld [vmem:[%s4526_s13 + $0x30] sm:$0xff] }
0x16ef   :  { %3421 = vmatpush3.xpose.msk.msra.mxu1 %vm547_vm5, %v2101_v54  ;;  %3422 = vmatprep.mubr.msk.f32.mxu1 %vm3606_vm4, %v3605_v29 }
0x16f0   :  { %3425 = vmatprep.subr.mxu1 %v3605_v29 }
0x16f2   :  { %3423 = vmatmul.mubr.msk.f32.vlgmr.msra.gmra.mxu1 %vm547_vm5, %v4322_v33 }
0x16f3   :  { %3427 = vmatprep.mubr.msk.f32.mxu1 %vm3606_vm4, %v3605_v29 }
0x17a2   :  { %v2339_v61 = vpop.f32.mrf.mxu0 }
0x17a3   :  { %v2343_v51 = vmul.f32 0.25, %v2339_v61  ;;  %v3038_v61 = vld [vmem:[%s4526_s13 + $0x28] sm:$0xff] }
0x17a4   :  { %v3434_v63 = vpop.f32.mrf.mxu0 }
0x17a5   :  { %v2344_v0 = vsel %vm623_vm6, %v2343_v51, -inf }
0x17a6   :  { %2345 = vmax.xlane.f32.xlu1 %v2344_v0 }
0x17ae   :  { %v2087_v1 = vpop.f32.mrf.mxu1 }
0x17b0   :  { %v3419_v2 = vpop.f32.mrf.mxu1 }
0x17b2   :  { %v2172_v3 = vpop.f32.mrf.mxu1 }
0x17b3   :  { %v2176_v59 = vmul.f32 0.25, %v2172_v3 }
0x17b4   :  { %v3424_v4 = vpop.f32.mrf.mxu1 }
0x17b5   :  { %v2177_v5 = vsel %vm623_vm6, %v2176_v59, -inf }
0x17b6   :  { %2178 = vmax.xlane.f32.xlu0 %v2177_v5  ;;  %v3035_v5 = vld [vmem:[%s4524_s11 + $0x1] ss:$0 sm:$0xff]  ;;  %s2958_s11 = sshll.u32 %s3613_s8, 4  ;;  %s2959_s11 = int_to_ptr.vmem [resolvable:$true] %s2958_s11 }
0x17b7   :  { %2355 = vrot.lane.b32.xlu1 %v4322_v33, %s3611_s24  ;;  %p3588_p1 = scmp.lt.s32.totalorder %s2959_s11, %s2959_s11 }
0x182f   :  { %v2346_v60 = vpop.xlane.xlu1 %2345 }
0x1830   :  { %v2347_v6 = vsub.f32 %v2343_v51, %v2346_v60  ;;  %v3037_v51 = vld [vmem:[%s4526_s13 + $0x20] sm:$0xff] }
0x1832   :  { %v2348_v7 = vmul.f32 1.442695, %v2347_v6  ;;  %v3036_v6 = vld [vmem:[%s4525_s12 + $0x1] ss:$0 sm:$0xff] }
0x1833   :  { %v2356_v21 = vpop.permute.xlu1 %2355 }
0x1834   :  { %3561 = vpow2.f32 %v2348_v7 }
0x183f   :  { %v2179_v8 = vpop.xlane.xlu0 %2178 }
0x1840   :  { %v2180_v9 = vsub.f32 %v2176_v59, %v2179_v8 }
0x1841   :  { %v3562_v10 = vpop.eup %3561 }
0x1842   :  { %v2181_v11 = vmul.f32 1.442695, %v2180_v9  ;;  %v2350_v12 = vsel %vm623_vm6, %v3562_v10, 0.0 }
0x1843   :  { %2351 = vadd.xlane.f32.xlu0 %v2350_v12 }
0x1844   :  { %3563 = vpow2.f32 %v2181_v11 }
0x1851   :  { %v3564_v13 = vpop.eup %3563 }
0x1852   :  { %v2183_v14 = vsel %vm623_vm6, %v3564_v13, 0.0 }
0x1853   :  { %2184 = vadd.xlane.f32.xlu0 %v2183_v14  ;;  %v3059_v14 = vld [vmem:[%s4528_s15 + $0xf0] sm:$0xff] }
0x1869   :  { %2188 = vrot.lane.b32.xlu0 %v4322_v33, %s3609_s23 }
0x18cc   :  { %v2352_v15 = vpop.xlane.xlu0 %2351 }
0x18dc   :  { %v2185_v16 = vpop.xlane.xlu0 %2184 }
0x18dd   :  { %3565 = vrcp.f32 %v2185_v16  ;;  %v3057_v16 = vld [vmem:[%s4528_s15 + $0xe0] sm:$0xff] }
0x18de   :  { %3567 = vrcp.f32 %v2352_v15  ;;  %v3058_v15 = vld [vmem:[%s4528_s15 + $0xe8] sm:$0xff] }
0x18e0   :  { %v2189_v17 = vpop.permute.xlu0 %2188 }
0x18e1   :  { %3426 = vmatpush3.msk.msra.mxu1 %vm403_vm1, %v2189_v17  ;;  %v3056_v17 = vld [vmem:[%s4528_s15 + $0xd8] sm:$0xff] }
0x18e2   :  { %3435 = vmatprep.subr.mxu1 %v3605_v29 }
0x18ea   :  { %v3566_v18 = vpop.eup %3565 }
0x18eb   :  { %v2187_v19 = vmul.f32 %v3566_v18, %v3564_v13  ;;  %v3568_v20 = vpop.eup %3567  ;;  %v3060_v13 = vld [vmem:[%s4528_s15 + $0xf8] sm:$0xff]  ;;  %v3055_v18 = vld [vmem:[%s4528_s15 + $0xd0] sm:$0xff] }
0x18ec   :  { %v2354_v22 = vmul.f32 %v3568_v20, %v3562_v10  ;;  %3462 = vmatprep.subr.mxu0 %v3060_v13  ;;  %v3053_v20 = vld [vmem:[%s4528_s15 + $0xc0] sm:$0xff] }
0x18ed   :  { %3428 = vmatmul.mubr.msk.f32.vlgmr.msra.gmra.mxu1 %vm637_vm7, %v2187_v19  ;;  %v3054_v19 = vld [vmem:[%s4528_s15 + $0xc8] sm:$0xff] }
0x18ee   :  { %3436 = vmatpush3.msk.msra.mxu1 %vm403_vm1, %v2356_v21  ;;  %3437 = vmatprep.mubr.msk.f32.mxu1 %vm3606_vm4, %v3605_v29  ;;  %v3052_v21 = vld [vmem:[%s4528_s15 + $0xb8] sm:$0xff] }
0x18ef   :  { %3451 = vmatprep.subr.mxu1 %v3040_v56 }
0x18f1   :  { %3438 = vmatmul.mubr.msk.f32.vlgmr.msra.gmra.mxu1 %vm637_vm7, %v2354_v22  ;;  %v3051_v22 = vld [vmem:[%s4528_s15 + $0xb0] sm:$0xff] }
0x18f2   :  { %3452 = vmatpush3.msra.mxu1 %v3040_v56 }
0x18f3   :  { %3453 = vmatprep.subr.mxu1 %v3039_v57 }
0x18f4   :  { %3454 = vmatpush3.msra.mxu1 %v3039_v57 }
0x18f5   :  { %3455 = vmatprep.subr.mxu1 %v3038_v61 }
0x18f6   :  { %3456 = vmatpush3.msra.mxu1 %v3038_v61 }
0x18f7   :  { %3457 = vmatprep.subr.mxu1 %v3037_v51 }
0x18f8   :  { %3458 = vmatpush3.msra.mxu1 %v3037_v51 }
0x18f9   :  { %3497 = vmatprep.subr.mxu1 %v3605_v29 }
0x19ad   :  { %v2261_v27 = vpop.f32.mrf.mxu1 }
0x19af   :  { %v3429_v28 = vpop.f32.mrf.mxu1 }
0x19b0   :  { %v3045_v28 = vld [vmem:[%s4528_s15 + $0x80] sm:$0xff] }
0x19b1   :  { %v2428_v30 = vpop.f32.mrf.mxu1 }
0x19b2   :  { %2433 = vrot.lane.b32.xlu1 %v2428_v30, %s3612_s4  ;;  %v3042_v30 = vld [vmem:[%s4527_s14 + $0x1] ss:$0 sm:$0xff] }
0x19b3   :  { %v3439_v31 = vpop.f32.mrf.mxu1 }
0x19b6   :  { %2092 = vrot.lane.b32.xlu1 %v2087_v1, %s3612_s4 }
0x1a24   :  { %v2434_v32 = vpop.permute.xlu1 %2433 }
0x1a25   :  { %v2436_v33 = vsel %vm547_vm5, %v2261_v27, %v2434_v32  ;;  %v3046_v27 = vld [vmem:[%s4528_s15 + $0x88] sm:$0xff] }
0x1a26   :  { %v2438_v34 = vrot.slane %v2436_v33, 3 }
0x1a28   :  { %v2093_v35 = vpop.permute.xlu1 %2092 }
0x1a29   :  { %v2095_v36 = vsel %vm547_vm5, %v4334_v39, %v2093_v35 }
0x1a2a   :  { %v2440_v37 = vsel %vm403_vm1, %v2095_v36, %v2438_v34 }
0x1a2b   :  { %3448 = vmatprep.mubr.msk.f32.mxu0 %vm407_vm2, %v2440_v37 }
0x1a2c   :  { %3449 = vmatmul.mubr.msk.f32.vlgmr.msra.gmra.mxu0 %vm407_vm2, %v2438_v34 }
0x1a2d   :  { %3463 = vmatpush3.msra.mxu0 %v3060_v13 }
0x1a2e   :  { %3464 = vmatprep.subr.mxu0 %v3059_v14 }
0x1a2f   :  { %3465 = vmatpush3.msra.mxu0 %v3059_v14 }
0x1a30   :  { %3466 = vmatprep.subr.mxu0 %v3058_v15 }
0x1a31   :  { %3467 = vmatpush3.msra.mxu0 %v3058_v15 }
0x1a32   :  { %3468 = vmatprep.subr.mxu0 %v3057_v16 }
0x1a33   :  { %3469 = vmatpush3.msra.mxu0 %v3057_v16 }
0x1a34   :  { %3470 = vmatprep.subr.mxu0 %v3056_v17 }
0x1a35   :  { %3471 = vmatpush3.msra.mxu0 %v3056_v17 }
0x1a36   :  { %3472 = vmatprep.subr.mxu0 %v3055_v18 }
0x1a37   :  { %3473 = vmatpush3.msra.mxu0 %v3055_v18 }
0x1a38   :  { %3474 = vmatprep.subr.mxu0 %v3054_v19 }
0x1a39   :  { %3475 = vmatpush3.msra.mxu0 %v3054_v19 }
0x1a3a   :  { %3476 = vmatprep.subr.mxu0 %v3053_v20 }
0x1a3b   :  { %3477 = vmatpush3.msra.mxu0 %v3053_v20 }
0x1a3c   :  { %3478 = vmatprep.subr.mxu0 %v3052_v21 }
0x1a3d   :  { %3479 = vmatpush3.msra.mxu0 %v3052_v21 }
0x1a3e   :  { %3480 = vmatprep.subr.mxu0 %v3051_v22 }
0x1a3f   :  { %3481 = vmatpush3.msra.mxu0 %v3051_v22 }
0x1a40   :  { %3482 = vmatprep.subr.mxu0 %v3050_v23 }
0x1a41   :  { %3483 = vmatpush3.msra.mxu0 %v3050_v23 }
0x1a42   :  { %3484 = vmatprep.subr.mxu0 %v3049_v24 }
0x1a43   :  { %3485 = vmatpush3.msra.mxu0 %v3049_v24  ;;  %v3062_v24 = vld [vmem:[%s4529_s16 + $0x1] ss:$0 sm:$0xff] }
0x1a44   :  { %3486 = vmatprep.subr.mxu0 %v3048_v25 }
0x1a45   :  { %3487 = vmatpush3.msra.mxu0 %v3048_v25 }
0x1a46   :  { %3488 = vmatprep.subr.mxu0 %v3047_v26 }
0x1a47   :  { %3489 = vmatpush3.msra.mxu0 %v3047_v26 }
0x1a48   :  { %3490 = vmatprep.subr.mxu0 %v3046_v27 }
0x1a49   :  { %3491 = vmatpush3.msra.mxu0 %v3046_v27 }
0x1a4a   :  { %3492 = vmatprep.subr.mxu0 %v3045_v28 }
0x1a4b   :  { %3493 = vmatpush3.msra.mxu0 %v3045_v28 }
0x1aec   :  { %v3450_v38 = vpop.f32.mrf.mxu0 }
0x1aed   :  { %v2527_v41 = vadd.f32 %v3450_v38, %v4269_v43 }
0x1aee   :  { %v2517_v42 = vpop.f32.mrf.mxu0 }
0x1aef   :  { %v2526_v44 = vadd.f32 %v2517_v42, %v4272_v45  ;;  %v2537_v46 = vadd.f32 %v3032_v40, %v2527_v41 }
0x1af1   :  { %v4396_v47 = vadd.f32 %v3032_v40, %v2526_v44  ;;  %v2545_v39 = vsel %vm411_vm3, %v2537_v46, 0.0 }
0x1af2   :  { %2546 = vadd.xlane.f32.xlu1 %v2545_v39 }
0x1af3   :  { %v2542_v48 = vsel %vm407_vm2, %v4396_v47, 0.0 }
0x1af4   :  { %2543 = vadd.xlane.f32.xlu0 %v2542_v48 }
0x1b7b   :  { %v2547_v49 = vpop.xlane.xlu1 %2546 }
0x1b7c   :  { %v2549_v50 = vmul.f32 0.03125, %v2547_v49 }
0x1b7d   :  { %v2544_v58 = vpop.xlane.xlu0 %2543 }
0x1b7e   :  { %v2548_v52 = vmul.f32 0.03125, %v2544_v58  ;;  %v2551_v53 = vsub.f32 %v2537_v46, %v2549_v50 }
0x1b80   :  { %v2550_v43 = vsub.f32 %v4396_v47, %v2548_v52  ;;  %v2553_v62 = vmul.f32 %v2551_v53, %v2551_v53 }
0x1b82   :  { %v2552_v54 = vmul.f32 %v2550_v43, %v2550_v43  ;;  %v2557_v55 = vsel %vm411_vm3, %v2553_v62, 0.0 }
0x1b84   :  { %v2554_v45 = vsel %vm407_vm2, %v2552_v54, 0.0 }
0x1b85   :  { %2555 = vadd.xlane.f32.xlu0 %v2554_v45 }
0x1b89   :  { %2558 = vadd.xlane.f32.xlu0 %v2557_v55 }
0x1c0e   :  { %v2556_v63 = vpop.xlane.xlu0 %2555 }
0x1c0f   :  { %v2560_v0 = vmul.f32 0.03125, %v2556_v63 }
0x1c11   :  { %v2562_v1 = vadd.f32 1e-06, %v2560_v0 }
0x1c12   :  { %v2559_v2 = vpop.xlane.xlu0 %2558 }
0x1c13   :  { %3569 = vrsqrt.f32 %v2562_v1  ;;  %v2561_v3 = vmul.f32 0.03125, %v2559_v2 }
0x1c15   :  { %v2563_v59 = vadd.f32 1e-06, %v2561_v3 }
0x1c17   :  { %3571 = vrsqrt.f32 %v2563_v59 }
0x1c20   :  { %v3570_v4 = vpop.eup %3569 }
0x1c21   :  { %v2566_v60 = vmul.f32 %v3570_v4, %v2550_v43 }
0x1c23   :  { %v2574_v7 = vmul.f32 %v3035_v5, %v2566_v60 }
0x1c24   :  { %v3572_v8 = vpop.eup %3571 }
0x1c25   :  { %v2567_v9 = vmul.f32 %v3572_v8, %v2551_v53  ;;  %v2582_v10 = vadd.f32 %v3036_v6, %v2574_v7 }
0x1c27   :  { %v2575_v11 = vmul.f32 %v3035_v5, %v2567_v9  ;;  %3459 = vmatprep.mubr.msk.f32.mxu1 %vm407_vm2, %v2582_v10 }
0x1c29   :  { %v2583_v12 = vadd.f32 %v3036_v6, %v2575_v11 }
0x1c2b   :  { %3460 = vmatmul.mubr.msk.f32.vlgmr.msra.gmra.mxu1 %vm407_vm2, %v2583_v12 }
0x1c2c   :  { %3505 = vmatprep.mubr.msk.f32.mxu1 %vm3606_vm4, %v3605_v29 }
0x1ceb   :  { %v3461_v31 = vpop.f32.mrf.mxu1 }
0x1cec   :  { %v2675_v32 = vadd.f32 %v3461_v31, %v3042_v30 }
0x1ced   :  { %v2669_v33 = vpop.f32.mrf.mxu1 }
0x1cee   :  { %v2681_v34 = vmul.f32 0.70710677, %v2675_v32  ;;  %v2670_v35 = vadd.f32 %v3042_v30, %v2669_v33  ;;  %v2679_v19 = vmul.f32 0.5, %v2675_v32 }
0x1cf0   :  { %v2683_v36 = vand.u32 2147483647, %v2681_v34  ;;  %v2680_v37 = vmul.f32 0.70710677, %v2670_v35  ;;  %vm2723_vm11 = vcmp.lt.f32.partialorder %v2681_v34, 0.0  ;;  %v2678_v17 = vmul.f32 0.5, %v2670_v35 }
0x1cf2   :  { %v2685_v38 = vmul.f32 0.3275911, %v2683_v36  ;;  %v2682_v40 = vand.u32 2147483647, %v2680_v37  ;;  %v2711_v46 = vsub.f32 0.0, %v2683_v36  ;;  %vm2722_vm12 = vcmp.lt.f32.partialorder %v2680_v37, 0.0 }
0x1cf3   :  { %v2867_v37 = vld [vmem:[%s4532_s19 + $0x8] sm:$0xff] }
0x1cf4   :  { %v2687_v41 = vadd.f32 1.0, %v2685_v38  ;;  %v2684_v42 = vmul.f32 0.3275911, %v2682_v40  ;;  %v2710_v39 = vsub.f32 0.0, %v2682_v40  ;;  %v2713_v48 = vmul.f32 %v2711_v46, %v2683_v36  ;;  %v2869_v36 = vld [vmem:[%s4532_s19 + $0x18] sm:$0xff]  ;;  %v2866_v38 = vld [vmem:[%s4532_s19] sm:$0xff] }
0x1cf5   :  { %3498 = vmatpush3.msra.mxu1 %v2869_v36  ;;  %v3063_v46 = vld [vmem:[%s4530_s17] ss:$0 sm:$0xff]  ;;  %s3583_s17 = scalar_lea.vmem %s2959_s11, 32 }
0x1cf6   :  { %3573 = vrcp.f32 %v2687_v41  ;;  %v2686_v44 = vadd.f32 1.0, %v2684_v42  ;;  %v2712_v50 = vmul.f32 %v2710_v39, %v2682_v40  ;;  %v2716_v52 = vmul.f32 1.442695, %v2713_v48  ;;  %3499 = vmatprep.subr.mxu1 %v3605_v29  ;;  %v3064_v48 = vld [vmem:[%s4531_s18] ss:$0 sm:$0xff]  ;;  %p3584_p0 = scmp.ne.s32.totalorder %s2959_s11, %s3583_s17  ;;  %p3589_p2 = scmp.lt.s32.totalorder %s3583_s17, %s3583_s17 }
0x1cf8   :  { %3575 = vrcp.f32 %v2686_v44  ;;  %v2714_v54 = vmul.f32 1.442695, %v2712_v50  ;;  %p3590_p3 = por %p3589_p2, %p3588_p1 }
0x1cf9   :  { %3577 = vpow2.f32 %v2716_v52 }
0x1cfa   :  { %3579 = vpow2.f32 %v2714_v54  ;;  %p3591_p4 = pnand %p3590_p3, %p3584_p0 }
0x1d03   :  { %v3574_v49 = vpop.eup %3573 }
0x1d04   :  { %v2693_v58 = vmul.f32 1.0614054, %v3574_v49 }
0x1d05   :  { %v3576_v53 = vpop.eup %3575 }
0x1d06   :  { %v2695_v43 = vadd.f32 -1.4531521, %v2693_v58  ;;  %v2692_v45 = vmul.f32 1.0614054, %v3576_v53  ;;  %v3578_v5 = vpop.eup %3577 }
0x1d07   :  { %v3580_v8 = vpop.eup %3579 }
0x1d08   :  { %v2697_v62 = vmul.f32 %v3574_v49, %v2695_v43  ;;  %v2694_v55 = vadd.f32 -1.4531521, %v2692_v45 }
0x1d0a   :  { %v2699_v56 = vadd.f32 1.4214138, %v2697_v62  ;;  %v2696_v57 = vmul.f32 %v3576_v53, %v2694_v55 }
0x1d0c   :  { %v2701_v61 = vmul.f32 %v3574_v49, %v2699_v56  ;;  %v2698_v51 = vadd.f32 1.4214138, %v2696_v57 }
0x1d0e   :  { %v2703_v63 = vadd.f32 -0.28449672, %v2701_v61  ;;  %v2700_v0 = vmul.f32 %v3576_v53, %v2698_v51 }
0x1d10   :  { %v2705_v1 = vmul.f32 %v3574_v49, %v2703_v63  ;;  %v2702_v2 = vadd.f32 -0.28449672, %v2700_v0 }
0x1d12   :  { %v2707_v3 = vadd.f32 0.2548296, %v2705_v1  ;;  %v2704_v59 = vmul.f32 %v3576_v53, %v2702_v2 }
0x1d14   :  { %v2709_v4 = vmul.f32 %v3574_v49, %v2707_v3  ;;  %v2706_v60 = vadd.f32 0.2548296, %v2704_v59 }
0x1d16   :  { %v2719_v6 = vmul.f32 %v3578_v5, %v2709_v4  ;;  %v2708_v7 = vmul.f32 %v3576_v53, %v2706_v60 }
0x1d18   :  { %v2721_v9 = vsub.f32 1.0, %v2719_v6  ;;  %v2718_v10 = vmul.f32 %v3580_v8, %v2708_v7 }
0x1d1a   :  { %v2725_v11 = vsub.f32 0.0, %v2721_v9  ;;  %v2720_v12 = vsub.f32 1.0, %v2718_v10 }
0x1d1c   :  { %v2727_v13 = vsel %vm2723_vm11, %v2725_v11, %v2721_v9  ;;  %v2724_v14 = vsub.f32 0.0, %v2720_v12 }
0x1d1d   :  { %v2729_v15 = vadd.f32 1.0, %v2727_v13 }
0x1d1e   :  { %v2726_v16 = vsel %vm2722_vm12, %v2724_v14, %v2720_v12 }
0x1d1f   :  { %v2728_v18 = vadd.f32 1.0, %v2726_v16  ;;  %v2731_v21 = vmul.f32 %v2729_v15, %v2679_v19 }
0x1d21   :  { %v2730_v20 = vmul.f32 %v2728_v18, %v2678_v17 }
0x1d23   :  { %3494 = vmatprep.mubr.f32.mxu0 %v2730_v20 }
0x1d24   :  { %3495 = vmatmul.mubr.f32.vlgmr.msra.gmra.mxu0 %v2731_v21 }
0x1de4   :  { %v3496_v22 = vpop.f32.mrf.mxu0 }
0x1de6   :  { %v2815_v23 = vpop.f32.mrf.mxu0 }
0x1de7   :  { %v2823_v25 = vadd.f32 %v2815_v23, %v4396_v47  ;;  %v2868_v47 = vld [vmem:[%s4532_s19 + $0x10] sm:$0xff] }
0x1de8   :  { %3500 = vmatpush3.msra.mxu1 %v2868_v47 }
0x1de9   :  { %v2832_v26 = vadd.f32 %v3062_v24, %v2823_v25  ;;  %3501 = vmatprep.subr.mxu1 %v3605_v29 }
0x1dea   :  { %3502 = vmatpush3.msra.mxu1 %v2867_v37 }
0x1deb   :  { %v2834_v27 = vrot.slane %v2832_v26, 4  ;;  %3503 = vmatprep.subr.mxu1 %v3605_v29  ;;  %v3065_v29 = vld [vmem:[%s4533_s20] ss:$0 sm:$0xff] }
0x1dec   :  { %3504 = vmatpush3.msra.mxu1 %v2866_v38 }
0x1ded   :  { %v2836_v28 = vsel %vm393_vm0, %v2832_v26, %v2834_v27 }
0x1dee   :  { %v2839_v30 = vsel %vm411_vm3, %v2836_v28, 0.0 }
0x1def   :  { %2840 = vadd.xlane.f32.xlu0 %v2839_v30 }
0x1e78   :  { %v2841_v31 = vpop.xlane.xlu0 %2840 }
0x1e79   :  { %v2842_v32 = vmul.f32 0.03125, %v2841_v31 }
0x1e7b   :  { %v2843_v33 = vsub.f32 %v2836_v28, %v2842_v32 }
0x1e7d   :  { %v2844_v34 = vmul.f32 %v2843_v33, %v2843_v33 }
0x1e7f   :  { %v2845_v35 = vsel %vm411_vm3, %v2844_v34, 0.0 }
0x1e80   :  { %2846 = vadd.xlane.f32.xlu1 %v2845_v35 }
0x1f09   :  { %v2847_v40 = vpop.xlane.xlu1 %2846 }
0x1f0a   :  { %v2848_v41 = vmul.f32 0.03125, %v2847_v40 }
0x1f0c   :  { %v2849_v42 = vadd.f32 1e-06, %v2848_v41 }
0x1f0e   :  { %3581 = vrsqrt.f32 %v2849_v42 }
0x1f1b   :  { %v3582_v44 = vpop.eup %3581 }
0x1f1c   :  { %v2851_v39 = vmul.f32 %v3582_v44, %v2843_v33 }
0x1f1e   :  { %v2858_v49 = vmul.f32 %v3063_v46, %v2851_v39 }
0x1f20   :  { %v2865_v50 = vadd.f32 %v3064_v48, %v2858_v49 }
0x1f22   :  { %3506 = vmatmul.mubr.msk.f32.vlgmr.msra.gmra.mxu1 %vm407_vm2, %v2865_v50 }
0x1fe2   :  { %v2946_v58 = vpop.f32.mrf.mxu1 }
0x1fe3   :  { %v2947_v52 = vadd.f32 %v3065_v29, %v2946_v58 }
0x1fe4   :  { %v3507_v53 = vpop.f32.mrf.mxu1 }
0x1fe5   :  { %2951 = vst.msk [vmem:[#allocation2] sm:$0x3] %vm2950_vm13, %v2947_v52 }
0x1fe6   :  { %3594 = shalt.err (!%p3591_p4)
}
0x1fe7   :  { %2961 = dma.vmem_to_hbm [thread:$0]  %s2959_s11, 32, %s4534_s21, [#allocation3]  }
0x1fe8   :  { %3603 = dma.done.wait [#allocation3], 32  }
0x1fe9   :  { %3604 = vsyncadd [#allocation3], 4294967264 }
0x1fea   :  { %2965 = vsyncpa [#allocation3], 1 }

</bundles_post_ra>
